<compile_context>
chip_gen: v7x
topology: tpu7x:2x2x1
jax: 0.10.0
libtpu: 0.0.40
codegen_flags: <defaults>
</compile_context>

<pallas_src>
import math
from functools import partial

import jax
import jax.numpy as jnp
from jax.experimental import pallas as pl
from jax.experimental.pallas import tpu as pltpu


_CPARAMS_1D = pltpu.CompilerParams(
    dimension_semantics=("parallel",),
    vmem_limit_bytes=32 * 1024 * 1024,
)


def _row_tile(n, target=256):
    """Largest multiple-of-8 divisor of n that is <= target (prefer >=2 steps)."""
    if n % 8 != 0 or n <= 8:
        return n
    cap = min(target, max(8, (n // 2) // 8 * 8))
    t = cap
    while t >= 8:
        if n % t == 0:
            return t
        t -= 8
    return n


# -------------------- Kernel A: fused self-attention block -------------------

def _attn_block_kernel(x_ref, wq_ref, bq_ref, wk_ref, bk_ref, wv_ref, bv_ref,
                       wout_ref, bout_ref, g_ref, b_ref, o_ref,
                       *, num_heads, eps):
    x = x_ref[0].astype(jnp.float32)                       # (S, E)
    S, E = x.shape
    dh = E // num_heads
    scale = 1.0 / math.sqrt(dh)

    attn = jnp.zeros((S, E), jnp.float32)
    for h in range(num_heads):                              # static unroll over heads
        q = (jnp.dot(x, wq_ref[h], preferred_element_type=jnp.float32)
             + bq_ref[h]) * scale                           # (S, Dh), scale folded in
        k = jnp.dot(x, wk_ref[h], preferred_element_type=jnp.float32) + bk_ref[h]
        v = jnp.dot(x, wv_ref[h], preferred_element_type=jnp.float32) + bv_ref[h]

        s = jax.lax.dot_general(q, k, (((1,), (1,)), ((), ())),
                                preferred_element_type=jnp.float32)   # (S, S)
        s = s - jnp.max(s, axis=-1, keepdims=True)
        p = jnp.exp(s)
        p = p * pl.reciprocal(jnp.sum(p, axis=-1, keepdims=True), approx=True)

        o_h = jnp.dot(p, v, preferred_element_type=jnp.float32)       # (S, Dh)
        # out_proj accumulated per head: concat_h(o_h) @ Wout == sum_h o_h @ Wout[h]
        attn = attn + jnp.dot(o_h, wout_ref[h], preferred_element_type=jnp.float32)

    y = x + attn + bout_ref[...].astype(jnp.float32)        # residual + out-proj bias
    mean = jnp.mean(y, axis=-1, keepdims=True)
    var = jnp.mean(jnp.square(y - mean), axis=-1, keepdims=True)
    y = (y - mean) * jax.lax.rsqrt(var + eps)
    o_ref[0] = (y * g_ref[...] + b_ref[...]).astype(o_ref.dtype)


def attention_block(x, p, num_heads, eps=1e-5):
    """x: (B, S, E) -> norm1(x + MHA(x)), one grid step per batch element."""
    B, S, E = x.shape
    H = num_heads
    Dh = E // H
    f2 = lambda i: (0, 0)
    f3 = lambda i: (0, 0, 0)
    return pl.pallas_call(
        partial(_attn_block_kernel, num_heads=H, eps=eps),
        out_shape=jax.ShapeDtypeStruct((B, S, E), x.dtype),
        grid=(B,),
        in_specs=[
            pl.BlockSpec((1, S, E), lambda i: (i, 0, 0)),   # x (per batch element)
            pl.BlockSpec((H, E, Dh), f3),                   # wq
            pl.BlockSpec((H, 1, Dh), f3),                   # bq
            pl.BlockSpec((H, E, Dh), f3),                   # wk
            pl.BlockSpec((H, 1, Dh), f3),                   # bk
            pl.BlockSpec((H, E, Dh), f3),                   # wv
            pl.BlockSpec((H, 1, Dh), f3),                   # bv
            pl.BlockSpec((H, Dh, E), f3),                   # wout
            pl.BlockSpec((1, E), f2),                       # bout
            pl.BlockSpec((1, E), f2),                       # ln1 gamma
            pl.BlockSpec((1, E), f2),                       # ln1 beta
        ],
        out_specs=pl.BlockSpec((1, S, E), lambda i: (i, 0, 0)),
        compiler_params=_CPARAMS_1D,
    )(x, p["wq"], p["bq"], p["wk"], p["bk"], p["wv"], p["bv"],
      p["wout"], p["bout"], p["ln1_g"], p["ln1_b"])


# ------------------------ Kernel B: fused FFN block ---------------------------

def _ffn_block_kernel(x_ref, w1_ref, b1_ref, w2_ref, b2_ref, g_ref, b_ref, o_ref,
                      *, eps):
    x = x_ref[...].astype(jnp.float32)                      # (TILE_N, E)
    h = jnp.dot(x, w1_ref[...], preferred_element_type=jnp.float32) + b1_ref[...]
    h = jnp.maximum(h, 0.0)
    y = x + jnp.dot(h, w2_ref[...], preferred_element_type=jnp.float32) + b2_ref[...]
    mean = jnp.mean(y, axis=-1, keepdims=True)
    var = jnp.mean(jnp.square(y - mean), axis=-1, keepdims=True)
    y = (y - mean) * jax.lax.rsqrt(var + eps)
    o_ref[...] = (y * g_ref[...] + b_ref[...]).astype(o_ref.dtype)


def ffn_block(x2, p, eps=1e-5):
    """x2: (N, E) -> norm2(x2 + linear2(relu(linear1(x2)))), tiled over rows."""
    N, E = x2.shape
    Hid = p["lin1_w"].shape[1]
    tn = _row_tile(N)
    f2 = lambda i: (0, 0)
    return pl.pallas_call(
        partial(_ffn_block_kernel, eps=eps),
        out_shape=jax.ShapeDtypeStruct((N, E), x2.dtype),
        grid=(N // tn,),
        in_specs=[
            pl.BlockSpec((tn, E), lambda i: (i, 0)),
            pl.BlockSpec((E, Hid), f2),
            pl.BlockSpec((1, Hid), f2),
            pl.BlockSpec((Hid, E), f2),
            pl.BlockSpec((1, E), f2),
            pl.BlockSpec((1, E), f2),
            pl.BlockSpec((1, E), f2),
        ],
        out_specs=pl.BlockSpec((tn, E), lambda i: (i, 0)),
        compiler_params=_CPARAMS_1D,
    )(x2, p["lin1_w"], p["lin1_b"], p["lin2_w"], p["lin2_b"],
      p["ln2_g"], p["ln2_b"])


# ---------------------- Kernel C: lane-dense decoder --------------------------

def _decoder_kernel(x_ref, w_ref, b_ref, o_ref):
    acc = jnp.dot(x_ref[...].astype(jnp.float32), w_ref[...],
                  preferred_element_type=jnp.float32) + b_ref[...]
    o_ref[...] = acc.astype(o_ref.dtype)


def decode(x2, w, b):
    """x2: (N, E), w: (E, OUT). OUT is padded to >=128 lanes for dense stores."""
    N, E = x2.shape
    OUT = w.shape[1]
    DP = max(128, -(-OUT // 128) * 128)
    w_pad = jnp.zeros((E, DP), w.dtype).at[:, :OUT].set(w)
    b_pad = jnp.zeros((1, DP), b.dtype).at[:, :OUT].set(b)
    tn = _row_tile(N)
    out = pl.pallas_call(
        _decoder_kernel,
        out_shape=jax.ShapeDtypeStruct((N, DP), x2.dtype),
        grid=(N // tn,),
        in_specs=[pl.BlockSpec((tn, E), lambda i: (i, 0)),
                  pl.BlockSpec((E, DP), lambda i: (0, 0)),
                  pl.BlockSpec((1, DP), lambda i: (0, 0))],
        out_specs=pl.BlockSpec((tn, DP), lambda i: (i, 0)),
        compiler_params=_CPARAMS_1D,
    )(x2, w_pad, b_pad)
    return out[:, :OUT]


# ----------------------------- model (JAX glue) -------------------------------

def encoder_forward(x_sbe, params, num_heads):
    """x_sbe: (S, B, E) (PyTorch batch_first=False layout) -> (S, B) for OUT=1."""
    S, B, E = x_sbe.shape
    x = jnp.transpose(x_sbe, (1, 0, 2))                     # (B, S, E): one relayout
    for p in params["layers"]:
        x = attention_block(x, p, num_heads)                # fused attn block
        x = ffn_block(x.reshape(B * S, E), p).reshape(B, S, E)   # fused FFN block
    dec = decode(x.reshape(B * S, E), params["dec_w"], params["dec_b"])  # (N, OUT)
    out = jnp.transpose(dec.reshape(B, S, -1), (1, 0, 2))   # (S, B, OUT)
    return jnp.squeeze(out)                                 # matches torch .squeeze()


def init_params(key, num_layers, embed, num_heads, hidden, out):
    H = num_heads
    Dh = embed // H
    layers = []
    for _ in range(num_layers):
        key, *ks = jax.random.split(key, 13)
        layers.append(dict(
            wq=0.05 * jax.random.normal(ks[0], (H, embed, Dh), jnp.float32),
            bq=0.05 * jax.random.normal(ks[1], (H, 1, Dh), jnp.float32),
            wk=0.05 * jax.random.normal(ks[2], (H, embed, Dh), jnp.float32),
            bk=0.05 * jax.random.normal(ks[3], (H, 1, Dh), jnp.float32),
            wv=0.05 * jax.random.normal(ks[4], (H, embed, Dh), jnp.float32),
            bv=0.05 * jax.random.normal(ks[5], (H, 1, Dh), jnp.float32),
            wout=0.05 * jax.random.normal(ks[6], (H, Dh, embed), jnp.float32),
            bout=0.05 * jax.random.normal(ks[7], (1, embed), jnp.float32),
            ln1_g=jnp.ones((1, embed), jnp.float32),
            ln1_b=jnp.zeros((1, embed), jnp.float32),
            lin1_w=0.05 * jax.random.normal(ks[8], (embed, hidden), jnp.float32),
            lin1_b=0.05 * jax.random.normal(ks[9], (1, hidden), jnp.float32),
            lin2_w=0.05 * jax.random.normal(ks[10], (hidden, embed), jnp.float32),
            lin2_b=0.05 * jax.random.normal(ks[11], (1, embed), jnp.float32),
            ln2_g=jnp.ones((1, embed), jnp.float32),
            ln2_b=jnp.zeros((1, embed), jnp.float32),
        ))
    key, k1, k2 = jax.random.split(key, 3)
    return dict(
        layers=layers,
        dec_w=0.05 * jax.random.normal(k1, (embed, out), jnp.float32),
        dec_b=0.05 * jax.random.normal(k2, (1, out), jnp.float32),
    )


if __name__ == "__main__":
    # Small shapes consistent with the module (embed divisible by num_heads).
    SEQ, BATCH = 8, 2
    EMBED, HEADS, HIDDEN, LAYERS, OUT = 64, 4, 128, 3, 1

    key = jax.random.PRNGKey(0)
    key, pkey, xkey = jax.random.split(key, 3)
    params = init_params(pkey, LAYERS, EMBED, HEADS, HIDDEN, OUT)
    x = jax.random.normal(xkey, (SEQ, BATCH, EMBED), jnp.float32)   # (S, B, E)

    fwd = jax.jit(partial(encoder_forward, num_heads=HEADS))
    y = jax.block_until_ready(fwd(x, params))
    assert y.shape == (SEQ, BATCH), y.shape
    assert bool(jnp.all(jnp.isfinite(y)))
    print("KERNEL_OK")
</pallas_src>

<mosaic_0001>
module attributes {stable_mosaic.version = 11 : i64} {
  func.func @_attn_block_kernel(%arg0: i32, %arg1: memref<1x8x64xf32, #tpu.memory_space<vmem>>, %arg2: memref<4x64x16xf32, #tpu.memory_space<vmem>>, %arg3: memref<4x1x16xf32, #tpu.memory_space<vmem>>, %arg4: memref<4x64x16xf32, #tpu.memory_space<vmem>>, %arg5: memref<4x1x16xf32, #tpu.memory_space<vmem>>, %arg6: memref<4x64x16xf32, #tpu.memory_space<vmem>>, %arg7: memref<4x1x16xf32, #tpu.memory_space<vmem>>, %arg8: memref<4x16x64xf32, #tpu.memory_space<vmem>>, %arg9: memref<1x64xf32, #tpu.memory_space<vmem>>, %arg10: memref<1x64xf32, #tpu.memory_space<vmem>>, %arg11: memref<1x64xf32, #tpu.memory_space<vmem>>, %arg12: memref<1x8x64xf32, #tpu.memory_space<vmem>>) attributes {dimension_semantics = [#tpu.dimension_semantics<parallel>], iteration_bounds = array<i64: 2>, scalar_prefetch = 0 : i64, scratch_operands = 0 : i64, tpu.core_type = #tpu.core_type<tc>, window_params = [{transform_indices = @transform_0, window_bounds = array<i64: 1, 8, 64>}, {pipeline_mode = #tpu.pipeline_mode<synchronous>, transform_indices = @transform_1, window_bounds = array<i64: 4, 64, 16>}, {pipeline_mode = #tpu.pipeline_mode<synchronous>, transform_indices = @transform_2, window_bounds = array<i64: 4, 1, 16>}, {pipeline_mode = #tpu.pipeline_mode<synchronous>, transform_indices = @transform_3, window_bounds = array<i64: 4, 64, 16>}, {pipeline_mode = #tpu.pipeline_mode<synchronous>, transform_indices = @transform_4, window_bounds = array<i64: 4, 1, 16>}, {pipeline_mode = #tpu.pipeline_mode<synchronous>, transform_indices = @transform_5, window_bounds = array<i64: 4, 64, 16>}, {pipeline_mode = #tpu.pipeline_mode<synchronous>, transform_indices = @transform_6, window_bounds = array<i64: 4, 1, 16>}, {pipeline_mode = #tpu.pipeline_mode<synchronous>, transform_indices = @transform_7, window_bounds = array<i64: 4, 16, 64>}, {pipeline_mode = #tpu.pipeline_mode<synchronous>, transform_indices = @transform_8, window_bounds = array<i64: 1, 64>}, {pipeline_mode = #tpu.pipeline_mode<synchronous>, transform_indices = @transform_9, window_bounds = array<i64: 1, 64>}, {pipeline_mode = #tpu.pipeline_mode<synchronous>, transform_indices = @transform_10, window_bounds = array<i64: 1, 64>}, {transform_indices = @transform_11, window_bounds = array<i64: 1, 8, 64>}]} {
    %c0 = arith.constant 0 : index
    %c0_0 = arith.constant 0 : index
    %c0_1 = arith.constant 0 : index
    %0 = vector.load %arg1[%c0, %c0_0, %c0_1] : memref<1x8x64xf32, #tpu.memory_space<vmem>>, vector<1x8x64xf32>
    %1 = vector.shape_cast %0 : vector<1x8x64xf32> to vector<8x64xf32>
    %cst = arith.constant 0.000000e+00 : f32
    %2 = vector.broadcast %cst : f32 to vector<8x64xf32>
    %c0_2 = arith.constant 0 : index
    %c0_3 = arith.constant 0 : index
    %c0_4 = arith.constant 0 : index
    %3 = vector.load %arg2[%c0_2, %c0_3, %c0_4] : memref<4x64x16xf32, #tpu.memory_space<vmem>>, vector<1x64x16xf32>
    %4 = vector.shape_cast %3 : vector<1x64x16xf32> to vector<64x16xf32>
    %cst_5 = arith.constant dense<0.000000e+00> : vector<8x16xf32>
    %5 = tpu.matmul %1, %4, %cst_5 {dimension_numbers = #tpu.dot_dimension_numbers<[1], [0], [0], [1], [0, 0, 1, 1], [], []>} : vector<8x64xf32>, vector<64x16xf32>, vector<8x16xf32> -> vector<8x16xf32>
    %c0_6 = arith.constant 0 : index
    %c0_7 = arith.constant 0 : index
    %c0_8 = arith.constant 0 : index
    %6 = vector.load %arg3[%c0_6, %c0_7, %c0_8] : memref<4x1x16xf32, #tpu.memory_space<vmem>>, vector<1x1x16xf32>
    %7 = vector.shape_cast %6 : vector<1x1x16xf32> to vector<1x16xf32>
    %8 = vector.broadcast %7 : vector<1x16xf32> to vector<8x16xf32>
    %9 = arith.addf %5, %8 : vector<8x16xf32>
    %cst_9 = arith.constant 2.500000e-01 : f32
    %10 = vector.broadcast %cst_9 : f32 to vector<8x16xf32>
    %11 = arith.mulf %9, %10 : vector<8x16xf32>
    %c0_10 = arith.constant 0 : index
    %c0_11 = arith.constant 0 : index
    %c0_12 = arith.constant 0 : index
    %12 = vector.load %arg4[%c0_10, %c0_11, %c0_12] : memref<4x64x16xf32, #tpu.memory_space<vmem>>, vector<1x64x16xf32>
    %13 = vector.shape_cast %12 : vector<1x64x16xf32> to vector<64x16xf32>
    %cst_13 = arith.constant dense<0.000000e+00> : vector<8x16xf32>
    %14 = tpu.matmul %1, %13, %cst_13 {dimension_numbers = #tpu.dot_dimension_numbers<[1], [0], [0], [1], [0, 0, 1, 1], [], []>} : vector<8x64xf32>, vector<64x16xf32>, vector<8x16xf32> -> vector<8x16xf32>
    %c0_14 = arith.constant 0 : index
    %c0_15 = arith.constant 0 : index
    %c0_16 = arith.constant 0 : index
    %15 = vector.load %arg5[%c0_14, %c0_15, %c0_16] : memref<4x1x16xf32, #tpu.memory_space<vmem>>, vector<1x1x16xf32>
    %16 = vector.shape_cast %15 : vector<1x1x16xf32> to vector<1x16xf32>
    %17 = vector.broadcast %16 : vector<1x16xf32> to vector<8x16xf32>
    %18 = arith.addf %14, %17 : vector<8x16xf32>
    %c0_17 = arith.constant 0 : index
    %c0_18 = arith.constant 0 : index
    %c0_19 = arith.constant 0 : index
    %19 = vector.load %arg6[%c0_17, %c0_18, %c0_19] : memref<4x64x16xf32, #tpu.memory_space<vmem>>, vector<1x64x16xf32>
    %20 = vector.shape_cast %19 : vector<1x64x16xf32> to vector<64x16xf32>
    %cst_20 = arith.constant dense<0.000000e+00> : vector<8x16xf32>
    %21 = tpu.matmul %1, %20, %cst_20 {dimension_numbers = #tpu.dot_dimension_numbers<[1], [0], [0], [1], [0, 0, 1, 1], [], []>} : vector<8x64xf32>, vector<64x16xf32>, vector<8x16xf32> -> vector<8x16xf32>
    %c0_21 = arith.constant 0 : index
    %c0_22 = arith.constant 0 : index
    %c0_23 = arith.constant 0 : index
    %22 = vector.load %arg7[%c0_21, %c0_22, %c0_23] : memref<4x1x16xf32, #tpu.memory_space<vmem>>, vector<1x1x16xf32>
    %23 = vector.shape_cast %22 : vector<1x1x16xf32> to vector<1x16xf32>
    %24 = vector.broadcast %23 : vector<1x16xf32> to vector<8x16xf32>
    %25 = arith.addf %21, %24 : vector<8x16xf32>
    %cst_24 = arith.constant dense<0.000000e+00> : vector<8x8xf32>
    %26 = tpu.matmul %11, %18, %cst_24 {dimension_numbers = #tpu.dot_dimension_numbers<[1], [1], [0], [0], [0, 0, 1, 0], [], []>} : vector<8x16xf32>, vector<8x16xf32>, vector<8x8xf32> -> vector<8x8xf32>
    %cst_25 = arith.constant dense<0xFF800000> : vector<8xf32>
    %27 = vector.multi_reduction <maximumf>, %26, %cst_25 [1] : vector<8x8xf32> to vector<8xf32>
    %28 = vector.shape_cast %27 : vector<8xf32> to vector<8x1xf32>
    %29 = vector.broadcast %28 : vector<8x1xf32> to vector<8x8xf32>
    %30 = arith.subf %26, %29 : vector<8x8xf32>
    %31 = math.exp %30 : vector<8x8xf32>
    %cst_26 = arith.constant dense<0.000000e+00> : vector<8xf32>
    %32 = vector.multi_reduction <add>, %31, %cst_26 [1] : vector<8x8xf32> to vector<8xf32>
    %33 = vector.shape_cast %32 : vector<8xf32> to vector<8x1xf32>
    %34 = tpu.reciprocal %33 {approx = true} : vector<8x1xf32> -> vector<8x1xf32>
    %35 = vector.broadcast %34 : vector<8x1xf32> to vector<8x8xf32>
    %36 = arith.mulf %31, %35 : vector<8x8xf32>
    %cst_27 = arith.constant dense<0.000000e+00> : vector<8x16xf32>
    %37 = tpu.matmul %36, %25, %cst_27 {dimension_numbers = #tpu.dot_dimension_numbers<[1], [0], [0], [1], [0, 0, 1, 1], [], []>} : vector<8x8xf32>, vector<8x16xf32>, vector<8x16xf32> -> vector<8x16xf32>
    %c0_28 = arith.constant 0 : index
    %c0_29 = arith.constant 0 : index
    %c0_30 = arith.constant 0 : index
    %38 = vector.load %arg8[%c0_28, %c0_29, %c0_30] : memref<4x16x64xf32, #tpu.memory_space<vmem>>, vector<1x16x64xf32>
    %39 = vector.shape_cast %38 : vector<1x16x64xf32> to vector<16x64xf32>
    %cst_31 = arith.constant dense<0.000000e+00> : vector<8x64xf32>
    %40 = tpu.matmul %37, %39, %cst_31 {dimension_numbers = #tpu.dot_dimension_numbers<[1], [0], [0], [1], [0, 0, 1, 1], [], []>} : vector<8x16xf32>, vector<16x64xf32>, vector<8x64xf32> -> vector<8x64xf32>
    %41 = arith.addf %2, %40 : vector<8x64xf32>
    %c1 = arith.constant 1 : index
    %c0_32 = arith.constant 0 : index
    %c0_33 = arith.constant 0 : index
    %42 = vector.load %arg2[%c1, %c0_32, %c0_33] : memref<4x64x16xf32, #tpu.memory_space<vmem>>, vector<1x64x16xf32>
    %43 = vector.shape_cast %42 : vector<1x64x16xf32> to vector<64x16xf32>
    %cst_34 = arith.constant dense<0.000000e+00> : vector<8x16xf32>
    %44 = tpu.matmul %1, %43, %cst_34 {dimension_numbers = #tpu.dot_dimension_numbers<[1], [0], [0], [1], [0, 0, 1, 1], [], []>} : vector<8x64xf32>, vector<64x16xf32>, vector<8x16xf32> -> vector<8x16xf32>
    %c1_35 = arith.constant 1 : index
    %c0_36 = arith.constant 0 : index
    %c0_37 = arith.constant 0 : index
    %45 = vector.load %arg3[%c1_35, %c0_36, %c0_37] : memref<4x1x16xf32, #tpu.memory_space<vmem>>, vector<1x1x16xf32>
    %46 = vector.shape_cast %45 : vector<1x1x16xf32> to vector<1x16xf32>
    %47 = vector.broadcast %46 : vector<1x16xf32> to vector<8x16xf32>
    %48 = arith.addf %44, %47 : vector<8x16xf32>
    %cst_38 = arith.constant 2.500000e-01 : f32
    %49 = vector.broadcast %cst_38 : f32 to vector<8x16xf32>
    %50 = arith.mulf %48, %49 : vector<8x16xf32>
    %c1_39 = arith.constant 1 : index
    %c0_40 = arith.constant 0 : index
    %c0_41 = arith.constant 0 : index
    %51 = vector.load %arg4[%c1_39, %c0_40, %c0_41] : memref<4x64x16xf32, #tpu.memory_space<vmem>>, vector<1x64x16xf32>
    %52 = vector.shape_cast %51 : vector<1x64x16xf32> to vector<64x16xf32>
    %cst_42 = arith.constant dense<0.000000e+00> : vector<8x16xf32>
    %53 = tpu.matmul %1, %52, %cst_42 {dimension_numbers = #tpu.dot_dimension_numbers<[1], [0], [0], [1], [0, 0, 1, 1], [], []>} : vector<8x64xf32>, vector<64x16xf32>, vector<8x16xf32> -> vector<8x16xf32>
    %c1_43 = arith.constant 1 : index
    %c0_44 = arith.constant 0 : index
    %c0_45 = arith.constant 0 : index
    %54 = vector.load %arg5[%c1_43, %c0_44, %c0_45] : memref<4x1x16xf32, #tpu.memory_space<vmem>>, vector<1x1x16xf32>
    %55 = vector.shape_cast %54 : vector<1x1x16xf32> to vector<1x16xf32>
    %56 = vector.broadcast %55 : vector<1x16xf32> to vector<8x16xf32>
    %57 = arith.addf %53, %56 : vector<8x16xf32>
    %c1_46 = arith.constant 1 : index
    %c0_47 = arith.constant 0 : index
    %c0_48 = arith.constant 0 : index
    %58 = vector.load %arg6[%c1_46, %c0_47, %c0_48] : memref<4x64x16xf32, #tpu.memory_space<vmem>>, vector<1x64x16xf32>
    %59 = vector.shape_cast %58 : vector<1x64x16xf32> to vector<64x16xf32>
    %cst_49 = arith.constant dense<0.000000e+00> : vector<8x16xf32>
    %60 = tpu.matmul %1, %59, %cst_49 {dimension_numbers = #tpu.dot_dimension_numbers<[1], [0], [0], [1], [0, 0, 1, 1], [], []>} : vector<8x64xf32>, vector<64x16xf32>, vector<8x16xf32> -> vector<8x16xf32>
    %c1_50 = arith.constant 1 : index
    %c0_51 = arith.constant 0 : index
    %c0_52 = arith.constant 0 : index
    %61 = vector.load %arg7[%c1_50, %c0_51, %c0_52] : memref<4x1x16xf32, #tpu.memory_space<vmem>>, vector<1x1x16xf32>
    %62 = vector.shape_cast %61 : vector<1x1x16xf32> to vector<1x16xf32>
    %63 = vector.broadcast %62 : vector<1x16xf32> to vector<8x16xf32>
    %64 = arith.addf %60, %63 : vector<8x16xf32>
    %cst_53 = arith.constant dense<0.000000e+00> : vector<8x8xf32>
    %65 = tpu.matmul %50, %57, %cst_53 {dimension_numbers = #tpu.dot_dimension_numbers<[1], [1], [0], [0], [0, 0, 1, 0], [], []>} : vector<8x16xf32>, vector<8x16xf32>, vector<8x8xf32> -> vector<8x8xf32>
    %cst_54 = arith.constant dense<0xFF800000> : vector<8xf32>
    %66 = vector.multi_reduction <maximumf>, %65, %cst_54 [1] : vector<8x8xf32> to vector<8xf32>
    %67 = vector.shape_cast %66 : vector<8xf32> to vector<8x1xf32>
    %68 = vector.broadcast %67 : vector<8x1xf32> to vector<8x8xf32>
    %69 = arith.subf %65, %68 : vector<8x8xf32>
    %70 = math.exp %69 : vector<8x8xf32>
    %cst_55 = arith.constant dense<0.000000e+00> : vector<8xf32>
    %71 = vector.multi_reduction <add>, %70, %cst_55 [1] : vector<8x8xf32> to vector<8xf32>
    %72 = vector.shape_cast %71 : vector<8xf32> to vector<8x1xf32>
    %73 = tpu.reciprocal %72 {approx = true} : vector<8x1xf32> -> vector<8x1xf32>
    %74 = vector.broadcast %73 : vector<8x1xf32> to vector<8x8xf32>
    %75 = arith.mulf %70, %74 : vector<8x8xf32>
    %cst_56 = arith.constant dense<0.000000e+00> : vector<8x16xf32>
    %76 = tpu.matmul %75, %64, %cst_56 {dimension_numbers = #tpu.dot_dimension_numbers<[1], [0], [0], [1], [0, 0, 1, 1], [], []>} : vector<8x8xf32>, vector<8x16xf32>, vector<8x16xf32> -> vector<8x16xf32>
    %c1_57 = arith.constant 1 : index
    %c0_58 = arith.constant 0 : index
    %c0_59 = arith.constant 0 : index
    %77 = vector.load %arg8[%c1_57, %c0_58, %c0_59] : memref<4x16x64xf32, #tpu.memory_space<vmem>>, vector<1x16x64xf32>
    %78 = vector.shape_cast %77 : vector<1x16x64xf32> to vector<16x64xf32>
    %cst_60 = arith.constant dense<0.000000e+00> : vector<8x64xf32>
    %79 = tpu.matmul %76, %78, %cst_60 {dimension_numbers = #tpu.dot_dimension_numbers<[1], [0], [0], [1], [0, 0, 1, 1], [], []>} : vector<8x16xf32>, vector<16x64xf32>, vector<8x64xf32> -> vector<8x64xf32>
    %80 = arith.addf %41, %79 : vector<8x64xf32>
    %c2 = arith.constant 2 : index
    %c0_61 = arith.constant 0 : index
    %c0_62 = arith.constant 0 : index
    %81 = vector.load %arg2[%c2, %c0_61, %c0_62] : memref<4x64x16xf32, #tpu.memory_space<vmem>>, vector<1x64x16xf32>
    %82 = vector.shape_cast %81 : vector<1x64x16xf32> to vector<64x16xf32>
    %cst_63 = arith.constant dense<0.000000e+00> : vector<8x16xf32>
    %83 = tpu.matmul %1, %82, %cst_63 {dimension_numbers = #tpu.dot_dimension_numbers<[1], [0], [0], [1], [0, 0, 1, 1], [], []>} : vector<8x64xf32>, vector<64x16xf32>, vector<8x16xf32> -> vector<8x16xf32>
    %c2_64 = arith.constant 2 : index
    %c0_65 = arith.constant 0 : index
    %c0_66 = arith.constant 0 : index
    %84 = vector.load %arg3[%c2_64, %c0_65, %c0_66] : memref<4x1x16xf32, #tpu.memory_space<vmem>>, vector<1x1x16xf32>
    %85 = vector.shape_cast %84 : vector<1x1x16xf32> to vector<1x16xf32>
    %86 = vector.broadcast %85 : vector<1x16xf32> to vector<8x16xf32>
    %87 = arith.addf %83, %86 : vector<8x16xf32>
    %cst_67 = arith.constant 2.500000e-01 : f32
    %88 = vector.broadcast %cst_67 : f32 to vector<8x16xf32>
    %89 = arith.mulf %87, %88 : vector<8x16xf32>
    %c2_68 = arith.constant 2 : index
    %c0_69 = arith.constant 0 : index
    %c0_70 = arith.constant 0 : index
    %90 = vector.load %arg4[%c2_68, %c0_69, %c0_70] : memref<4x64x16xf32, #tpu.memory_space<vmem>>, vector<1x64x16xf32>
    %91 = vector.shape_cast %90 : vector<1x64x16xf32> to vector<64x16xf32>
    %cst_71 = arith.constant dense<0.000000e+00> : vector<8x16xf32>
    %92 = tpu.matmul %1, %91, %cst_71 {dimension_numbers = #tpu.dot_dimension_numbers<[1], [0], [0], [1], [0, 0, 1, 1], [], []>} : vector<8x64xf32>, vector<64x16xf32>, vector<8x16xf32> -> vector<8x16xf32>
    %c2_72 = arith.constant 2 : index
    %c0_73 = arith.constant 0 : index
    %c0_74 = arith.constant 0 : index
    %93 = vector.load %arg5[%c2_72, %c0_73, %c0_74] : memref<4x1x16xf32, #tpu.memory_space<vmem>>, vector<1x1x16xf32>
    %94 = vector.shape_cast %93 : vector<1x1x16xf32> to vector<1x16xf32>
    %95 = vector.broadcast %94 : vector<1x16xf32> to vector<8x16xf32>
    %96 = arith.addf %92, %95 : vector<8x16xf32>
    %c2_75 = arith.constant 2 : index
    %c0_76 = arith.constant 0 : index
    %c0_77 = arith.constant 0 : index
    %97 = vector.load %arg6[%c2_75, %c0_76, %c0_77] : memref<4x64x16xf32, #tpu.memory_space<vmem>>, vector<1x64x16xf32>
    %98 = vector.shape_cast %97 : vector<1x64x16xf32> to vector<64x16xf32>
    %cst_78 = arith.constant dense<0.000000e+00> : vector<8x16xf32>
    %99 = tpu.matmul %1, %98, %cst_78 {dimension_numbers = #tpu.dot_dimension_numbers<[1], [0], [0], [1], [0, 0, 1, 1], [], []>} : vector<8x64xf32>, vector<64x16xf32>, vector<8x16xf32> -> vector<8x16xf32>
    %c2_79 = arith.constant 2 : index
    %c0_80 = arith.constant 0 : index
    %c0_81 = arith.constant 0 : index
    %100 = vector.load %arg7[%c2_79, %c0_80, %c0_81] : memref<4x1x16xf32, #tpu.memory_space<vmem>>, vector<1x1x16xf32>
    %101 = vector.shape_cast %100 : vector<1x1x16xf32> to vector<1x16xf32>
    %102 = vector.broadcast %101 : vector<1x16xf32> to vector<8x16xf32>
    %103 = arith.addf %99, %102 : vector<8x16xf32>
    %cst_82 = arith.constant dense<0.000000e+00> : vector<8x8xf32>
    %104 = tpu.matmul %89, %96, %cst_82 {dimension_numbers = #tpu.dot_dimension_numbers<[1], [1], [0], [0], [0, 0, 1, 0], [], []>} : vector<8x16xf32>, vector<8x16xf32>, vector<8x8xf32> -> vector<8x8xf32>
    %cst_83 = arith.constant dense<0xFF800000> : vector<8xf32>
    %105 = vector.multi_reduction <maximumf>, %104, %cst_83 [1] : vector<8x8xf32> to vector<8xf32>
    %106 = vector.shape_cast %105 : vector<8xf32> to vector<8x1xf32>
    %107 = vector.broadcast %106 : vector<8x1xf32> to vector<8x8xf32>
    %108 = arith.subf %104, %107 : vector<8x8xf32>
    %109 = math.exp %108 : vector<8x8xf32>
    %cst_84 = arith.constant dense<0.000000e+00> : vector<8xf32>
    %110 = vector.multi_reduction <add>, %109, %cst_84 [1] : vector<8x8xf32> to vector<8xf32>
    %111 = vector.shape_cast %110 : vector<8xf32> to vector<8x1xf32>
    %112 = tpu.reciprocal %111 {approx = true} : vector<8x1xf32> -> vector<8x1xf32>
    %113 = vector.broadcast %112 : vector<8x1xf32> to vector<8x8xf32>
    %114 = arith.mulf %109, %113 : vector<8x8xf32>
    %cst_85 = arith.constant dense<0.000000e+00> : vector<8x16xf32>
    %115 = tpu.matmul %114, %103, %cst_85 {dimension_numbers = #tpu.dot_dimension_numbers<[1], [0], [0], [1], [0, 0, 1, 1], [], []>} : vector<8x8xf32>, vector<8x16xf32>, vector<8x16xf32> -> vector<8x16xf32>
    %c2_86 = arith.constant 2 : index
    %c0_87 = arith.constant 0 : index
    %c0_88 = arith.constant 0 : index
    %116 = vector.load %arg8[%c2_86, %c0_87, %c0_88] : memref<4x16x64xf32, #tpu.memory_space<vmem>>, vector<1x16x64xf32>
    %117 = vector.shape_cast %116 : vector<1x16x64xf32> to vector<16x64xf32>
    %cst_89 = arith.constant dense<0.000000e+00> : vector<8x64xf32>
    %118 = tpu.matmul %115, %117, %cst_89 {dimension_numbers = #tpu.dot_dimension_numbers<[1], [0], [0], [1], [0, 0, 1, 1], [], []>} : vector<8x16xf32>, vector<16x64xf32>, vector<8x64xf32> -> vector<8x64xf32>
    %119 = arith.addf %80, %118 : vector<8x64xf32>
    %c3 = arith.constant 3 : index
    %c0_90 = arith.constant 0 : index
    %c0_91 = arith.constant 0 : index
    %120 = vector.load %arg2[%c3, %c0_90, %c0_91] : memref<4x64x16xf32, #tpu.memory_space<vmem>>, vector<1x64x16xf32>
    %121 = vector.shape_cast %120 : vector<1x64x16xf32> to vector<64x16xf32>
    %cst_92 = arith.constant dense<0.000000e+00> : vector<8x16xf32>
    %122 = tpu.matmul %1, %121, %cst_92 {dimension_numbers = #tpu.dot_dimension_numbers<[1], [0], [0], [1], [0, 0, 1, 1], [], []>} : vector<8x64xf32>, vector<64x16xf32>, vector<8x16xf32> -> vector<8x16xf32>
    %c3_93 = arith.constant 3 : index
    %c0_94 = arith.constant 0 : index
    %c0_95 = arith.constant 0 : index
    %123 = vector.load %arg3[%c3_93, %c0_94, %c0_95] : memref<4x1x16xf32, #tpu.memory_space<vmem>>, vector<1x1x16xf32>
    %124 = vector.shape_cast %123 : vector<1x1x16xf32> to vector<1x16xf32>
    %125 = vector.broadcast %124 : vector<1x16xf32> to vector<8x16xf32>
    %126 = arith.addf %122, %125 : vector<8x16xf32>
    %cst_96 = arith.constant 2.500000e-01 : f32
    %127 = vector.broadcast %cst_96 : f32 to vector<8x16xf32>
    %128 = arith.mulf %126, %127 : vector<8x16xf32>
    %c3_97 = arith.constant 3 : index
    %c0_98 = arith.constant 0 : index
    %c0_99 = arith.constant 0 : index
    %129 = vector.load %arg4[%c3_97, %c0_98, %c0_99] : memref<4x64x16xf32, #tpu.memory_space<vmem>>, vector<1x64x16xf32>
    %130 = vector.shape_cast %129 : vector<1x64x16xf32> to vector<64x16xf32>
    %cst_100 = arith.constant dense<0.000000e+00> : vector<8x16xf32>
    %131 = tpu.matmul %1, %130, %cst_100 {dimension_numbers = #tpu.dot_dimension_numbers<[1], [0], [0], [1], [0, 0, 1, 1], [], []>} : vector<8x64xf32>, vector<64x16xf32>, vector<8x16xf32> -> vector<8x16xf32>
    %c3_101 = arith.constant 3 : index
    %c0_102 = arith.constant 0 : index
    %c0_103 = arith.constant 0 : index
    %132 = vector.load %arg5[%c3_101, %c0_102, %c0_103] : memref<4x1x16xf32, #tpu.memory_space<vmem>>, vector<1x1x16xf32>
    %133 = vector.shape_cast %132 : vector<1x1x16xf32> to vector<1x16xf32>
    %134 = vector.broadcast %133 : vector<1x16xf32> to vector<8x16xf32>
    %135 = arith.addf %131, %134 : vector<8x16xf32>
    %c3_104 = arith.constant 3 : index
    %c0_105 = arith.constant 0 : index
    %c0_106 = arith.constant 0 : index
    %136 = vector.load %arg6[%c3_104, %c0_105, %c0_106] : memref<4x64x16xf32, #tpu.memory_space<vmem>>, vector<1x64x16xf32>
    %137 = vector.shape_cast %136 : vector<1x64x16xf32> to vector<64x16xf32>
    %cst_107 = arith.constant dense<0.000000e+00> : vector<8x16xf32>
    %138 = tpu.matmul %1, %137, %cst_107 {dimension_numbers = #tpu.dot_dimension_numbers<[1], [0], [0], [1], [0, 0, 1, 1], [], []>} : vector<8x64xf32>, vector<64x16xf32>, vector<8x16xf32> -> vector<8x16xf32>
    %c3_108 = arith.constant 3 : index
    %c0_109 = arith.constant 0 : index
    %c0_110 = arith.constant 0 : index
    %139 = vector.load %arg7[%c3_108, %c0_109, %c0_110] : memref<4x1x16xf32, #tpu.memory_space<vmem>>, vector<1x1x16xf32>
    %140 = vector.shape_cast %139 : vector<1x1x16xf32> to vector<1x16xf32>
    %141 = vector.broadcast %140 : vector<1x16xf32> to vector<8x16xf32>
    %142 = arith.addf %138, %141 : vector<8x16xf32>
    %cst_111 = arith.constant dense<0.000000e+00> : vector<8x8xf32>
    %143 = tpu.matmul %128, %135, %cst_111 {dimension_numbers = #tpu.dot_dimension_numbers<[1], [1], [0], [0], [0, 0, 1, 0], [], []>} : vector<8x16xf32>, vector<8x16xf32>, vector<8x8xf32> -> vector<8x8xf32>
    %cst_112 = arith.constant dense<0xFF800000> : vector<8xf32>
    %144 = vector.multi_reduction <maximumf>, %143, %cst_112 [1] : vector<8x8xf32> to vector<8xf32>
    %145 = vector.shape_cast %144 : vector<8xf32> to vector<8x1xf32>
    %146 = vector.broadcast %145 : vector<8x1xf32> to vector<8x8xf32>
    %147 = arith.subf %143, %146 : vector<8x8xf32>
    %148 = math.exp %147 : vector<8x8xf32>
    %cst_113 = arith.constant dense<0.000000e+00> : vector<8xf32>
    %149 = vector.multi_reduction <add>, %148, %cst_113 [1] : vector<8x8xf32> to vector<8xf32>
    %150 = vector.shape_cast %149 : vector<8xf32> to vector<8x1xf32>
    %151 = tpu.reciprocal %150 {approx = true} : vector<8x1xf32> -> vector<8x1xf32>
    %152 = vector.broadcast %151 : vector<8x1xf32> to vector<8x8xf32>
    %153 = arith.mulf %148, %152 : vector<8x8xf32>
    %cst_114 = arith.constant dense<0.000000e+00> : vector<8x16xf32>
    %154 = tpu.matmul %153, %142, %cst_114 {dimension_numbers = #tpu.dot_dimension_numbers<[1], [0], [0], [1], [0, 0, 1, 1], [], []>} : vector<8x8xf32>, vector<8x16xf32>, vector<8x16xf32> -> vector<8x16xf32>
    %c3_115 = arith.constant 3 : index
    %c0_116 = arith.constant 0 : index
    %c0_117 = arith.constant 0 : index
    %155 = vector.load %arg8[%c3_115, %c0_116, %c0_117] : memref<4x16x64xf32, #tpu.memory_space<vmem>>, vector<1x16x64xf32>
    %156 = vector.shape_cast %155 : vector<1x16x64xf32> to vector<16x64xf32>
    %cst_118 = arith.constant dense<0.000000e+00> : vector<8x64xf32>
    %157 = tpu.matmul %154, %156, %cst_118 {dimension_numbers = #tpu.dot_dimension_numbers<[1], [0], [0], [1], [0, 0, 1, 1], [], []>} : vector<8x16xf32>, vector<16x64xf32>, vector<8x64xf32> -> vector<8x64xf32>
    %158 = arith.addf %119, %157 : vector<8x64xf32>
    %159 = arith.addf %1, %158 : vector<8x64xf32>
    %c0_119 = arith.constant 0 : index
    %c0_120 = arith.constant 0 : index
    %160 = vector.load %arg9[%c0_119, %c0_120] : memref<1x64xf32, #tpu.memory_space<vmem>>, vector<1x64xf32>
    %161 = vector.broadcast %160 : vector<1x64xf32> to vector<8x64xf32>
    %162 = arith.addf %159, %161 : vector<8x64xf32>
    %cst_121 = arith.constant dense<0.000000e+00> : vector<8xf32>
    %163 = vector.multi_reduction <add>, %162, %cst_121 [1] : vector<8x64xf32> to vector<8xf32>
    %164 = vector.shape_cast %163 : vector<8xf32> to vector<8x1xf32>
    %cst_122 = arith.constant 6.400000e+01 : f32
    %165 = vector.broadcast %cst_122 : f32 to vector<8x1xf32>
    %166 = arith.divf %164, %165 : vector<8x1xf32>
    %167 = vector.broadcast %166 : vector<8x1xf32> to vector<8x64xf32>
    %168 = arith.subf %162, %167 : vector<8x64xf32>
    %169 = arith.mulf %168, %168 : vector<8x64xf32>
    %cst_123 = arith.constant dense<0.000000e+00> : vector<8xf32>
    %170 = vector.multi_reduction <add>, %169, %cst_123 [1] : vector<8x64xf32> to vector<8xf32>
    %171 = vector.shape_cast %170 : vector<8xf32> to vector<8x1xf32>
    %cst_124 = arith.constant 6.400000e+01 : f32
    %172 = vector.broadcast %cst_124 : f32 to vector<8x1xf32>
    %173 = arith.divf %171, %172 : vector<8x1xf32>
    %174 = vector.broadcast %166 : vector<8x1xf32> to vector<8x64xf32>
    %175 = arith.subf %162, %174 : vector<8x64xf32>
    %cst_125 = arith.constant 9.99999974E-6 : f32
    %176 = vector.broadcast %cst_125 : f32 to vector<8x1xf32>
    %177 = arith.addf %173, %176 : vector<8x1xf32>
    %178 = math.rsqrt %177 : vector<8x1xf32>
    %179 = vector.broadcast %178 : vector<8x1xf32> to vector<8x64xf32>
    %180 = arith.mulf %175, %179 : vector<8x64xf32>
    %c0_126 = arith.constant 0 : index
    %c0_127 = arith.constant 0 : index
    %181 = vector.load %arg10[%c0_126, %c0_127] : memref<1x64xf32, #tpu.memory_space<vmem>>, vector<1x64xf32>
    %182 = vector.broadcast %181 : vector<1x64xf32> to vector<8x64xf32>
    %183 = arith.mulf %180, %182 : vector<8x64xf32>
    %c0_128 = arith.constant 0 : index
    %c0_129 = arith.constant 0 : index
    %184 = vector.load %arg11[%c0_128, %c0_129] : memref<1x64xf32, #tpu.memory_space<vmem>>, vector<1x64xf32>
    %185 = vector.broadcast %184 : vector<1x64xf32> to vector<8x64xf32>
    %186 = arith.addf %183, %185 : vector<8x64xf32>
    %c0_130 = arith.constant 0 : index
    %c0_131 = arith.constant 0 : index
    %c0_132 = arith.constant 0 : index
    %187 = vector.load %arg12[%c0_130, %c0_131, %c0_132] : memref<1x8x64xf32, #tpu.memory_space<vmem>>, vector<1x8x64xf32>
    %188 = vector.shape_cast %187 : vector<1x8x64xf32> to vector<8x64xf32>
    %189 = vector.shape_cast %186 : vector<8x64xf32> to vector<1x8x64xf32>
    tpu.vector_store %arg12[%c0_130, %c0_131, %c0_132], %189 {strides = array<i32>} : memref<1x8x64xf32, #tpu.memory_space<vmem>>, vector<1x8x64xf32>,
    return
  }
  func.func @transform_0(%arg0: i32) -> (i32, i32, i32) {
    %c0_i32 = arith.constant 0 : i32
    %c0_i32_0 = arith.constant 0 : i32
    %c0_i32_1 = arith.constant 0 : i32
    return %arg0, %c0_i32, %c0_i32_0 : i32, i32, i32
  }
  func.func @transform_1(%arg0: i32) -> (i32, i32, i32) {
    %c0_i32 = arith.constant 0 : i32
    %c0_i32_0 = arith.constant 0 : i32
    %c0_i32_1 = arith.constant 0 : i32
    %c0_i32_2 = arith.constant 0 : i32
    return %c0_i32, %c0_i32_0, %c0_i32_1 : i32, i32, i32
  }
  func.func @transform_2(%arg0: i32) -> (i32, i32, i32) {
    %c0_i32 = arith.constant 0 : i32
    %c0_i32_0 = arith.constant 0 : i32
    %c0_i32_1 = arith.constant 0 : i32
    %c0_i32_2 = arith.constant 0 : i32
    return %c0_i32, %c0_i32_0, %c0_i32_1 : i32, i32, i32
  }
  func.func @transform_3(%arg0: i32) -> (i32, i32, i32) {
    %c0_i32 = arith.constant 0 : i32
    %c0_i32_0 = arith.constant 0 : i32
    %c0_i32_1 = arith.constant 0 : i32
    %c0_i32_2 = arith.constant 0 : i32
    return %c0_i32, %c0_i32_0, %c0_i32_1 : i32, i32, i32
  }
  func.func @transform_4(%arg0: i32) -> (i32, i32, i32) {
    %c0_i32 = arith.constant 0 : i32
    %c0_i32_0 = arith.constant 0 : i32
    %c0_i32_1 = arith.constant 0 : i32
    %c0_i32_2 = arith.constant 0 : i32
    return %c0_i32, %c0_i32_0, %c0_i32_1 : i32, i32, i32
  }
  func.func @transform_5(%arg0: i32) -> (i32, i32, i32) {
    %c0_i32 = arith.constant 0 : i32
    %c0_i32_0 = arith.constant 0 : i32
    %c0_i32_1 = arith.constant 0 : i32
    %c0_i32_2 = arith.constant 0 : i32
    return %c0_i32, %c0_i32_0, %c0_i32_1 : i32, i32, i32
  }
  func.func @transform_6(%arg0: i32) -> (i32, i32, i32) {
    %c0_i32 = arith.constant 0 : i32
    %c0_i32_0 = arith.constant 0 : i32
    %c0_i32_1 = arith.constant 0 : i32
    %c0_i32_2 = arith.constant 0 : i32
    return %c0_i32, %c0_i32_0, %c0_i32_1 : i32, i32, i32
  }
  func.func @transform_7(%arg0: i32) -> (i32, i32, i32) {
    %c0_i32 = arith.constant 0 : i32
    %c0_i32_0 = arith.constant 0 : i32
    %c0_i32_1 = arith.constant 0 : i32
    %c0_i32_2 = arith.constant 0 : i32
    return %c0_i32, %c0_i32_0, %c0_i32_1 : i32, i32, i32
  }
  func.func @transform_8(%arg0: i32) -> (i32, i32) {
    %c0_i32 = arith.constant 0 : i32
    %c0_i32_0 = arith.constant 0 : i32
    %c0_i32_1 = arith.constant 0 : i32
    return %c0_i32, %c0_i32_0 : i32, i32
  }
  func.func @transform_9(%arg0: i32) -> (i32, i32) {
    %c0_i32 = arith.constant 0 : i32
    %c0_i32_0 = arith.constant 0 : i32
    %c0_i32_1 = arith.constant 0 : i32
    return %c0_i32, %c0_i32_0 : i32, i32
  }
  func.func @transform_10(%arg0: i32) -> (i32, i32) {
    %c0_i32 = arith.constant 0 : i32
    %c0_i32_0 = arith.constant 0 : i32
    %c0_i32_1 = arith.constant 0 : i32
    return %c0_i32, %c0_i32_0 : i32, i32
  }
  func.func @transform_11(%arg0: i32) -> (i32, i32, i32) {
    %c0_i32 = arith.constant 0 : i32
    %c0_i32_0 = arith.constant 0 : i32
    %c0_i32_1 = arith.constant 0 : i32
    return %arg0, %c0_i32, %c0_i32_0 : i32, i32, i32
  }
}

module attributes {stable_mosaic.version = 11 : i64} {
  func.func @_ffn_block_kernel(%arg0: i32, %arg1: memref<8x64xf32, #tpu.memory_space<vmem>>, %arg2: memref<64x128xf32, #tpu.memory_space<vmem>>, %arg3: memref<1x128xf32, #tpu.memory_space<vmem>>, %arg4: memref<128x64xf32, #tpu.memory_space<vmem>>, %arg5: memref<1x64xf32, #tpu.memory_space<vmem>>, %arg6: memref<1x64xf32, #tpu.memory_space<vmem>>, %arg7: memref<1x64xf32, #tpu.memory_space<vmem>>, %arg8: memref<8x64xf32, #tpu.memory_space<vmem>>) attributes {dimension_semantics = [#tpu.dimension_semantics<parallel>], iteration_bounds = array<i64: 2>, scalar_prefetch = 0 : i64, scratch_operands = 0 : i64, tpu.core_type = #tpu.core_type<tc>, window_params = [{transform_indices = @transform_0, window_bounds = array<i64: 8, 64>}, {pipeline_mode = #tpu.pipeline_mode<synchronous>, transform_indices = @transform_1, window_bounds = array<i64: 64, 128>}, {pipeline_mode = #tpu.pipeline_mode<synchronous>, transform_indices = @transform_2, window_bounds = array<i64: 1, 128>}, {pipeline_mode = #tpu.pipeline_mode<synchronous>, transform_indices = @transform_3, window_bounds = array<i64: 128, 64>}, {pipeline_mode = #tpu.pipeline_mode<synchronous>, transform_indices = @transform_4, window_bounds = array<i64: 1, 64>}, {pipeline_mode = #tpu.pipeline_mode<synchronous>, transform_indices = @transform_5, window_bounds = array<i64: 1, 64>}, {pipeline_mode = #tpu.pipeline_mode<synchronous>, transform_indices = @transform_6, window_bounds = array<i64: 1, 64>}, {transform_indices = @transform_7, window_bounds = array<i64: 8, 64>}]} {
    %c0 = arith.constant 0 : index
    %c0_0 = arith.constant 0 : index
    %0 = vector.load %arg1[%c0, %c0_0] : memref<8x64xf32, #tpu.memory_space<vmem>>, vector<8x64xf32>
    %c0_1 = arith.constant 0 : index
    %c0_2 = arith.constant 0 : index
    %1 = vector.load %arg2[%c0_1, %c0_2] : memref<64x128xf32, #tpu.memory_space<vmem>>, vector<64x128xf32>
    %cst = arith.constant dense<0.000000e+00> : vector<8x128xf32>
    %2 = tpu.matmul %0, %1, %cst {dimension_numbers = #tpu.dot_dimension_numbers<[1], [0], [0], [1], [0, 0, 1, 1], [], []>} : vector<8x64xf32>, vector<64x128xf32>, vector<8x128xf32> -> vector<8x128xf32>
    %c0_3 = arith.constant 0 : index
    %c0_4 = arith.constant 0 : index
    %3 = vector.load %arg3[%c0_3, %c0_4] : memref<1x128xf32, #tpu.memory_space<vmem>>, vector<1x128xf32>
    %4 = vector.broadcast %3 : vector<1x128xf32> to vector<8x128xf32>
    %5 = arith.addf %2, %4 : vector<8x128xf32>
    %cst_5 = arith.constant 0.000000e+00 : f32
    %6 = vector.broadcast %cst_5 : f32 to vector<8x128xf32>
    %7 = arith.maximumf %5, %6 : vector<8x128xf32>
    %c0_6 = arith.constant 0 : index
    %c0_7 = arith.constant 0 : index
    %8 = vector.load %arg4[%c0_6, %c0_7] : memref<128x64xf32, #tpu.memory_space<vmem>>, vector<128x64xf32>
    %cst_8 = arith.constant dense<0.000000e+00> : vector<8x64xf32>
    %9 = tpu.matmul %7, %8, %cst_8 {dimension_numbers = #tpu.dot_dimension_numbers<[1], [0], [0], [1], [0, 0, 1, 1], [], []>} : vector<8x128xf32>, vector<128x64xf32>, vector<8x64xf32> -> vector<8x64xf32>
    %10 = arith.addf %0, %9 : vector<8x64xf32>
    %c0_9 = arith.constant 0 : index
    %c0_10 = arith.constant 0 : index
    %11 = vector.load %arg5[%c0_9, %c0_10] : memref<1x64xf32, #tpu.memory_space<vmem>>, vector<1x64xf32>
    %12 = vector.broadcast %11 : vector<1x64xf32> to vector<8x64xf32>
    %13 = arith.addf %10, %12 : vector<8x64xf32>
    %cst_11 = arith.constant dense<0.000000e+00> : vector<8xf32>
    %14 = vector.multi_reduction <add>, %13, %cst_11 [1] : vector<8x64xf32> to vector<8xf32>
    %15 = vector.shape_cast %14 : vector<8xf32> to vector<8x1xf32>
    %cst_12 = arith.constant 6.400000e+01 : f32
    %16 = vector.broadcast %cst_12 : f32 to vector<8x1xf32>
    %17 = arith.divf %15, %16 : vector<8x1xf32>
    %18 = vector.broadcast %17 : vector<8x1xf32> to vector<8x64xf32>
    %19 = arith.subf %13, %18 : vector<8x64xf32>
    %20 = arith.mulf %19, %19 : vector<8x64xf32>
    %cst_13 = arith.constant dense<0.000000e+00> : vector<8xf32>
    %21 = vector.multi_reduction <add>, %20, %cst_13 [1] : vector<8x64xf32> to vector<8xf32>
    %22 = vector.shape_cast %21 : vector<8xf32> to vector<8x1xf32>
    %cst_14 = arith.constant 6.400000e+01 : f32
    %23 = vector.broadcast %cst_14 : f32 to vector<8x1xf32>
    %24 = arith.divf %22, %23 : vector<8x1xf32>
    %25 = vector.broadcast %17 : vector<8x1xf32> to vector<8x64xf32>
    %26 = arith.subf %13, %25 : vector<8x64xf32>
    %cst_15 = arith.constant 9.99999974E-6 : f32
    %27 = vector.broadcast %cst_15 : f32 to vector<8x1xf32>
    %28 = arith.addf %24, %27 : vector<8x1xf32>
    %29 = math.rsqrt %28 : vector<8x1xf32>
    %30 = vector.broadcast %29 : vector<8x1xf32> to vector<8x64xf32>
    %31 = arith.mulf %26, %30 : vector<8x64xf32>
    %c0_16 = arith.constant 0 : index
    %c0_17 = arith.constant 0 : index
    %32 = vector.load %arg6[%c0_16, %c0_17] : memref<1x64xf32, #tpu.memory_space<vmem>>, vector<1x64xf32>
    %33 = vector.broadcast %32 : vector<1x64xf32> to vector<8x64xf32>
    %34 = arith.mulf %31, %33 : vector<8x64xf32>
    %c0_18 = arith.constant 0 : index
    %c0_19 = arith.constant 0 : index
    %35 = vector.load %arg7[%c0_18, %c0_19] : memref<1x64xf32, #tpu.memory_space<vmem>>, vector<1x64xf32>
    %36 = vector.broadcast %35 : vector<1x64xf32> to vector<8x64xf32>
    %37 = arith.addf %34, %36 : vector<8x64xf32>
    %c0_20 = arith.constant 0 : index
    %c0_21 = arith.constant 0 : index
    %38 = vector.load %arg8[%c0_20, %c0_21] : memref<8x64xf32, #tpu.memory_space<vmem>>, vector<8x64xf32>
    tpu.vector_store %arg8[%c0_20, %c0_21], %37 {strides = array<i32>} : memref<8x64xf32, #tpu.memory_space<vmem>>, vector<8x64xf32>,
    return
  }
  func.func @transform_0(%arg0: i32) -> (i32, i32) {
    %c0_i32 = arith.constant 0 : i32
    %c0_i32_0 = arith.constant 0 : i32
    return %arg0, %c0_i32 : i32, i32
  }
  func.func @transform_1(%arg0: i32) -> (i32, i32) {
    %c0_i32 = arith.constant 0 : i32
    %c0_i32_0 = arith.constant 0 : i32
    %c0_i32_1 = arith.constant 0 : i32
    return %c0_i32, %c0_i32_0 : i32, i32
  }
  func.func @transform_2(%arg0: i32) -> (i32, i32) {
    %c0_i32 = arith.constant 0 : i32
    %c0_i32_0 = arith.constant 0 : i32
    %c0_i32_1 = arith.constant 0 : i32
    return %c0_i32, %c0_i32_0 : i32, i32
  }
  func.func @transform_3(%arg0: i32) -> (i32, i32) {
    %c0_i32 = arith.constant 0 : i32
    %c0_i32_0 = arith.constant 0 : i32
    %c0_i32_1 = arith.constant 0 : i32
    return %c0_i32, %c0_i32_0 : i32, i32
  }
  func.func @transform_4(%arg0: i32) -> (i32, i32) {
    %c0_i32 = arith.constant 0 : i32
    %c0_i32_0 = arith.constant 0 : i32
    %c0_i32_1 = arith.constant 0 : i32
    return %c0_i32, %c0_i32_0 : i32, i32
  }
  func.func @transform_5(%arg0: i32) -> (i32, i32) {
    %c0_i32 = arith.constant 0 : i32
    %c0_i32_0 = arith.constant 0 : i32
    %c0_i32_1 = arith.constant 0 : i32
    return %c0_i32, %c0_i32_0 : i32, i32
  }
  func.func @transform_6(%arg0: i32) -> (i32, i32) {
    %c0_i32 = arith.constant 0 : i32
    %c0_i32_0 = arith.constant 0 : i32
    %c0_i32_1 = arith.constant 0 : i32
    return %c0_i32, %c0_i32_0 : i32, i32
  }
  func.func @transform_7(%arg0: i32) -> (i32, i32) {
    %c0_i32 = arith.constant 0 : i32
    %c0_i32_0 = arith.constant 0 : i32
    return %arg0, %c0_i32 : i32, i32
  }
}

module attributes {stable_mosaic.version = 11 : i64} {
  func.func @_decoder_kernel(%arg0: i32, %arg1: memref<8x64xf32, #tpu.memory_space<vmem>>, %arg2: memref<64x128xf32, #tpu.memory_space<vmem>>, %arg3: memref<1x128xf32, #tpu.memory_space<vmem>>, %arg4: memref<8x128xf32, #tpu.memory_space<vmem>>) attributes {dimension_semantics = [#tpu.dimension_semantics<parallel>], iteration_bounds = array<i64: 2>, scalar_prefetch = 0 : i64, scratch_operands = 0 : i64, tpu.core_type = #tpu.core_type<tc>, window_params = [{transform_indices = @transform_0, window_bounds = array<i64: 8, 64>}, {pipeline_mode = #tpu.pipeline_mode<synchronous>, transform_indices = @transform_1, window_bounds = array<i64: 64, 128>}, {pipeline_mode = #tpu.pipeline_mode<synchronous>, transform_indices = @transform_2, window_bounds = array<i64: 1, 128>}, {transform_indices = @transform_3, window_bounds = array<i64: 8, 128>}]} {
    %c0 = arith.constant 0 : index
    %c0_0 = arith.constant 0 : index
    %0 = vector.load %arg1[%c0, %c0_0] : memref<8x64xf32, #tpu.memory_space<vmem>>, vector<8x64xf32>
    %c0_1 = arith.constant 0 : index
    %c0_2 = arith.constant 0 : index
    %1 = vector.load %arg2[%c0_1, %c0_2] : memref<64x128xf32, #tpu.memory_space<vmem>>, vector<64x128xf32>
    %cst = arith.constant dense<0.000000e+00> : vector<8x128xf32>
    %2 = tpu.matmul %0, %1, %cst {dimension_numbers = #tpu.dot_dimension_numbers<[1], [0], [0], [1], [0, 0, 1, 1], [], []>} : vector<8x64xf32>, vector<64x128xf32>, vector<8x128xf32> -> vector<8x128xf32>
    %c0_3 = arith.constant 0 : index
    %c0_4 = arith.constant 0 : index
    %3 = vector.load %arg3[%c0_3, %c0_4] : memref<1x128xf32, #tpu.memory_space<vmem>>, vector<1x128xf32>
    %4 = vector.broadcast %3 : vector<1x128xf32> to vector<8x128xf32>
    %5 = arith.addf %2, %4 : vector<8x128xf32>
    %c0_5 = arith.constant 0 : index
    %c0_6 = arith.constant 0 : index
    %6 = vector.load %arg4[%c0_5, %c0_6] : memref<8x128xf32, #tpu.memory_space<vmem>>, vector<8x128xf32>
    tpu.vector_store %arg4[%c0_5, %c0_6], %5 {strides = array<i32>} : memref<8x128xf32, #tpu.memory_space<vmem>>, vector<8x128xf32>,
    return
  }
  func.func @transform_0(%arg0: i32) -> (i32, i32) {
    %c0_i32 = arith.constant 0 : i32
    %c0_i32_0 = arith.constant 0 : i32
    return %arg0, %c0_i32 : i32, i32
  }
  func.func @transform_1(%arg0: i32) -> (i32, i32) {
    %c0_i32 = arith.constant 0 : i32
    %c0_i32_0 = arith.constant 0 : i32
    %c0_i32_1 = arith.constant 0 : i32
    return %c0_i32, %c0_i32_0 : i32, i32
  }
  func.func @transform_2(%arg0: i32) -> (i32, i32) {
    %c0_i32 = arith.constant 0 : i32
    %c0_i32_0 = arith.constant 0 : i32
    %c0_i32_1 = arith.constant 0 : i32
    return %c0_i32, %c0_i32_0 : i32, i32
  }
  func.func @transform_3(%arg0: i32) -> (i32, i32) {
    %c0_i32 = arith.constant 0 : i32
    %c0_i32_0 = arith.constant 0 : i32
    return %arg0, %c0_i32 : i32, i32
  }
}

</mosaic_0001>

<bundles_post_ra>
// kernel: encoder_forward.8
= control target key start
LH: loop header
LB: loop body
LE: loop exit
PB: predicated region body
PF: predicated region fallthrough
CT: control target
= control target key end

     0   :  { %s738_s24 = smov 0   ;;  %s862_s0 = inlined_call_operand.vmem [shape: f32[16,64], index: 0, kind: input, shape index: {}]   ;;  %s863_s1 = inlined_call_operand.vmem [shape: f32[64,128], index: 1, kind: input, shape index: {}]   ;;  %s864_s2 = inlined_call_operand.vmem [shape: f32[1,128], index: 2, kind: input, shape index: {}]   ;;  %s865_s3 = inlined_call_operand.vmem [shape: f32[128,64], index: 3, kind: input, shape index: {}]   ;;  %s866_s4 = inlined_call_operand.vmem [shape: f32[1,64], index: 4, kind: input, shape index: {}]   ;;  %s867_s5 = inlined_call_operand.vmem [shape: f32[1,64], index: 5, kind: input, shape index: {}]   ;;  %s868_s6 = inlined_call_operand.vmem [shape: f32[1,64], index: 6, kind: input, shape index: {}]   ;;  %s869_s7 = inlined_call_operand.vmem [shape: f32[16,64], index: 7, kind: output, shape index: {}]  }
   0x1 LB: > { %s544_s25 = sadd.s32 4294967295, %s693_s24   ;;  %p548_p0 = scmp.ge.s32.totalorder %s693_s24, 1  ;;  %s693_s24 = sphi %s738_s24, %s17_s24  }
   0x2   : > { %p236_p1 = scmp.lt.s32.totalorder %s693_s24, 3 }
   0x4   : > { %p237_p2 = pnand %p548_p0, %p236_p1 }
   0x5   : > { %v275_v0 = vld [vmem:[%s863_s1] sm:$0xff] (!%p237_p2)  ;;  %v276_v1 = vld [vmem:[%s863_s1 + $0x8] sm:$0xff] (!%p237_p2)  ;;  %v277_v2 = vld [vmem:[%s863_s1 + $0x10] sm:$0xff] (!%p237_p2)  ;;  %v695_v3 = vmov (!%p237_p2), 0.0|0.0   ;;  %vm696_vm0 = vmmov (!%p237_p2), 0   ;;  %v697_v6 = vmov (!%p237_p2), 0.0  }
   0x6   : > { %240 = sbr.rel (%p237_p2) target bundleno = 769 (0x301), region = 48  ;;  %638 = vmatprep.subr.bf16.mxu0 (!%p237_p2), %v695_v3  ;;  %v639_v4 = vpack.c.bf16 (!%p237_p2), %v276_v1, %v275_v0  ;;  %v278_v5 = vld [vmem:[%s863_s1 + $0x18] sm:$0xff] (!%p237_p2)  ;;  %600 = vmatprep.mubr.msk.f32.mxu0 (!%p237_p2), %vm696_vm0, %v697_v6  ;;  %p266_p3 = scmp.lt.s32.totalorder (!%p237_p2), %s544_s25, 1  ;;  %v365_v7 = vld [vmem:[%s865_s3] sm:$0xff] (!%p237_p2)  ;;  %v366_v9 = vld [vmem:[%s865_s3 + $0x8] sm:$0xff] (!%p237_p2)  ;;  %vm290_vm1 = vcmask (!%p237_p2), 523264  }
   0x7   : > { %650 = vmatprep.subr.bf16.mxu1 (!%p237_p2), %v695_v3  ;;  %635 = vmatprep.mubr.msk.f32.mxu1 (!%p237_p2), %vm696_vm0, %v697_v6  ;;  %v642_v8 = vpack.c.bf16 (!%p237_p2), %v278_v5, %v277_v2  ;;  %v367_v10 = vld [vmem:[%s865_s3 + $0x10] sm:$0xff] (!%p237_p2)  ;;  %v368_v11 = vld [vmem:[%s865_s3 + $0x18] sm:$0xff] (!%p237_p2)  ;;  %v279_v12 = vld [vmem:[%s863_s1 + $0x20] sm:$0xff] (!%p237_p2)  ;;  %v651_v14 = vpack.c.bf16 (!%p237_p2), %v366_v9, %v365_v7 }
   0x8   : > { %640 = vmatpush3.bf16.msra.mxu0 (!%p237_p2), %v639_v4  ;;  %v280_v13 = vld [vmem:[%s863_s1 + $0x28] sm:$0xff] (!%p237_p2)  ;;  %v654_v15 = vpack.c.bf16 (!%p237_p2), %v368_v11, %v367_v10  ;;  %v369_v17 = vld [vmem:[%s865_s3 + $0x20] sm:$0xff] (!%p237_p2)  ;;  %v281_v19 = vld [vmem:[%s863_s1 + $0x30] sm:$0xff] (!%p237_p2) }
   0x9   : > { %641 = vmatprep.subr.bf16.mxu0 (!%p237_p2), %v695_v3  ;;  %652 = vmatpush3.bf16.msra.mxu1 (!%p237_p2), %v651_v14  ;;  %v645_v16 = vpack.c.bf16 (!%p237_p2), %v280_v13, %v279_v12  ;;  %v370_v18 = vld [vmem:[%s865_s3 + $0x28] sm:$0xff] (!%p237_p2)  ;;  %v282_v20 = vld [vmem:[%s863_s1 + $0x38] sm:$0xff] (!%p237_p2)  ;;  %v371_v23 = vld [vmem:[%s865_s3 + $0x30] sm:$0xff] (!%p237_p2) }
   0xa   : > { %653 = vmatprep.subr.bf16.mxu1 (!%p237_p2), %v695_v3  ;;  %v657_v21 = vpack.c.bf16 (!%p237_p2), %v370_v18, %v369_v17  ;;  %v648_v22 = vpack.c.bf16 (!%p237_p2), %v282_v20, %v281_v19  ;;  %v372_v24 = vld [vmem:[%s865_s3 + $0x38] sm:$0xff] (!%p237_p2)  ;;  %v373_v27 = vld [vmem:[%s865_s3 + $0x40] sm:$0xff] (!%p237_p2)  ;;  %v374_v28 = vld [vmem:[%s865_s3 + $0x48] sm:$0xff] (!%p237_p2) }
   0xb   : > { %v660_v25 = vpack.c.bf16 (!%p237_p2), %v372_v24, %v371_v23  ;;  %v663_v29 = vpack.c.bf16 (!%p237_p2), %v374_v28, %v373_v27  ;;  %v375_v30 = vld [vmem:[%s865_s3 + $0x50] sm:$0xff] (!%p237_p2)  ;;  %v376_v31 = vld [vmem:[%s865_s3 + $0x58] sm:$0xff] (!%p237_p2)  ;;  %v377_v33 = vld [vmem:[%s865_s3 + $0x60] sm:$0xff] (!%p237_p2) }
   0xc   : > { %643 = vmatpush3.bf16.msra.mxu0 (!%p237_p2), %v642_v8  ;;  %v666_v32 = vpack.c.bf16 (!%p237_p2), %v376_v31, %v375_v30  ;;  %v378_v34 = vld [vmem:[%s865_s3 + $0x68] sm:$0xff] (!%p237_p2)  ;;  %v379_v36 = vld [vmem:[%s865_s3 + $0x70] sm:$0xff] (!%p237_p2)  ;;  %v380_v37 = vld [vmem:[%s865_s3 + $0x78] sm:$0xff] (!%p237_p2) }
   0xd   : > { %s871_s25 = smov (!%p266_p3, %s544_s25), 1  ;;  %644 = vmatprep.subr.bf16.mxu0 %v695_v3  ;;  %655 = vmatpush3.bf16.msra.mxu1 %v654_v15  ;;  %v669_v35 = vpack.c.bf16 %v378_v34, %v377_v33  ;;  %v672_v38 = vpack.c.bf16 %v380_v37, %v379_v36  ;;  %v551_v39 = vld [vmem:[%s864_s2] ss:$0 sm:$0xff] }
   0xe   : > { %s549_s10 = sshll.u32 %s871_s25, 3  ;;  %656 = vmatprep.subr.bf16.mxu1 %v695_v3  ;;  %v553_v45 = vld [vmem:[%s866_s4] ss:$0 sm:$0xff] }
   0xf   : > { %s269_s17 = scalar_lea.vmem %s862_s0, %s549_s10  ;;  %v554_v59 = vld [vmem:[%s867_s5] ss:$0 sm:$0xff]  ;;  %s273_s26 = scalar_lea.vmem %s869_s7, %s549_s10 }
  0x10   : > { %646 = vmatpush3.bf16.msra.mxu0 %v645_v16  ;;  %v274_v26 = vld [vmem:[%s269_s17] sm:$0xff] }
  0x11   : > { %647 = vmatprep.subr.bf16.mxu0 %v695_v3  ;;  %658 = vmatpush3.bf16.msra.mxu1 %v657_v21  ;;  %v555_v61 = vld [vmem:[%s868_s6] ss:$0 sm:$0xff] }
  0x12   : > { %659 = vmatprep.subr.bf16.mxu1 %v695_v3 }
  0x14   : > { %649 = vmatpush3.bf16.msra.mxu0 %v648_v22 }
  0x15   : > { %661 = vmatpush3.bf16.msra.mxu1 %v660_v25 }
  0x16   : > { %662 = vmatprep.subr.bf16.mxu1 %v695_v3 }
  0x17   : > { %601 = vmatmul.mubr.msk.f32.vlgmr.msra.gmra.mrb[0].mxu0 %vm290_vm1, %v274_v26 }
  0x19   : > { %664 = vmatpush3.bf16.msra.mxu1 %v663_v29 }
  0x1a   : > { %665 = vmatprep.subr.bf16.mxu1 %v695_v3 }
  0x1d   : > { %667 = vmatpush3.bf16.msra.mxu1 %v666_v32 }
  0x1e   : > { %668 = vmatprep.subr.bf16.mxu1 %v695_v3 }
  0x21   : > { %670 = vmatpush3.bf16.msra.mxu1 %v669_v35 }
  0x22   : > { %671 = vmatprep.subr.bf16.mxu1 %v695_v3 }
  0x25   : > { %673 = vmatpush3.bf16.msra.mxu1 %v672_v38 }
  0xea   : > { %v360_v40 = vpop.f32.mrb[0].mxu0 }
  0xeb   : > { %v361_v41 = vadd.f32 %v551_v39, %v360_v40  ;;  %v602_v42 = vpop.f32.mrb[1].mxu0 }
  0xed   : > { %v364_v43 = vmax.f32 %v361_v41, 0.0 }
  0xef   : > { %636 = vmatmul.mubr.f32.vlgmr.msra.gmra.mrb[0].mxu1 %v364_v43 }
 0x1c2   : > { %v447_v44 = vpop.f32.mrb[0].mxu1 }
 0x1c3   : > { %v451_v46 = vadd.f32 %v447_v44, %v274_v26  ;;  %v637_v47 = vpop.f32.mrb[1].mxu1 }
 0x1c5   : > { %v459_v48 = vadd.f32 %v553_v45, %v451_v46 }
 0x1c7   : > { %v460_v49 = vsel %vm290_vm1, %v459_v48, 0.0 }
 0x1c8   : > { %461 = vadd.xlane.f32.xlu0 %v460_v49 }
 0x255   : > { %v462_v50 = vpop.xlane.xlu0 %461 }
 0x256   : > { %v464_v51 = vmul.f32 0.015625, %v462_v50 }
 0x258   : > { %v465_v52 = vsub.f32 %v459_v48, %v464_v51 }
 0x25a   : > { %v466_v53 = vmul.f32 %v465_v52, %v465_v52 }
 0x25c   : > { %v467_v54 = vsel %vm290_vm1, %v466_v53, 0.0 }
 0x25d   : > { %468 = vadd.xlane.f32.xlu0 %v467_v54 }
 0x2ea   : > { %v469_v55 = vpop.xlane.xlu0 %468 }
 0x2eb   : > { %v470_v56 = vmul.f32 0.015625, %v469_v55 }
 0x2ed   : > { %v471_v57 = vadd.f32 1e-05, %v470_v56 }
 0x2ef   : > { %685 = vrsqrt.f32 %v471_v57 }
 0x2f9   : > { %v686_v58 = vpop.eup %685 }
 0x2fa   : > { %v473_v60 = vmul.f32 %v686_v58, %v465_v52 }
 0x2fc   : > { %v481_v62 = vmul.f32 %v554_v59, %v473_v60 }
 0x2fe   : > { %v489_v63 = vadd.f32 %v555_v61, %v481_v62 }
 0x300   : > { %490 = vst.msk [vmem:[%s273_s26] sm:$0xff] %vm290_vm1, %v489_v63 }
 0x301 PF: > { %s17_s24 = sadd.s32 1, %s693_s24  }
 0x302   : > { %p14_p4 = scmp.ge.s32.totalorder %s17_s24, 4  }
 0x304   :  { %16 = sbr.rel (!%p14_p4) target bundleno = 1 (0x1), region = 78 }

// kernel: encoder_forward.13
= control target key start
LH: loop header
LB: loop body
LE: loop exit
PB: predicated region body
PF: predicated region fallthrough
CT: control target
= control target key end

     0   :  { %s403_s12 = smov 0   ;;  %s447_s0 = inlined_call_operand.vmem [shape: f32[16,64], index: 0, kind: input, shape index: {}]   ;;  %s448_s1 = inlined_call_operand.vmem [shape: f32[64,128], index: 1, kind: input, shape index: {}]   ;;  %s449_s2 = inlined_call_operand.vmem [shape: f32[1,128], index: 2, kind: input, shape index: {}]   ;;  %s450_s3 = inlined_call_operand.vmem [shape: f32[16,128], index: 3, kind: output, shape index: {}]  }
   0x1 LB: > { %s310_s13 = sadd.s32 4294967295, %s378_s12   ;;  %p314_p0 = scmp.ge.s32.totalorder %s378_s12, 1  ;;  %s378_s12 = sphi %s403_s12, %s13_s12  }
   0x2   : > { %p136_p1 = scmp.lt.s32.totalorder %s378_s12, 3 }
   0x4   : > { %p137_p2 = pnand %p314_p0, %p136_p1 }
   0x5   : > { %v167_v0 = vld [vmem:[%s448_s1] sm:$0xff] (!%p137_p2)  ;;  %v168_v1 = vld [vmem:[%s448_s1 + $0x8] sm:$0xff] (!%p137_p2)  ;;  %v169_v2 = vld [vmem:[%s448_s1 + $0x10] sm:$0xff] (!%p137_p2)  ;;  %v380_v3 = vmov (!%p137_p2), 0.0|0.0   ;;  %vm381_vm0 = vmmov (!%p137_p2), 0   ;;  %v382_v6 = vmov (!%p137_p2), 0.0  }
   0x6   : > { %140 = sbr.rel (%p137_p2) target bundleno = 238 (0xee), region = 32  ;;  %349 = vmatprep.subr.bf16.mxu0 (!%p137_p2), %v380_v3  ;;  %v350_v4 = vpack.c.bf16 (!%p137_p2), %v168_v1, %v167_v0  ;;  %v170_v5 = vld [vmem:[%s448_s1 + $0x18] sm:$0xff] (!%p137_p2)  ;;  %346 = vmatprep.mubr.msk.f32.mxu0 (!%p137_p2), %vm381_vm0, %v382_v6  ;;  %p158_p3 = scmp.lt.s32.totalorder (!%p137_p2), %s310_s13, 1  ;;  %v171_v8 = vld [vmem:[%s448_s1 + $0x20] sm:$0xff] (!%p137_p2)  ;;  %v172_v9 = vld [vmem:[%s448_s1 + $0x28] sm:$0xff] (!%p137_p2)  ;;  %vm182_vm1 = vcmask (!%p137_p2), 523264  }
   0x7   : > { %v353_v7 = vpack.c.bf16 (!%p137_p2), %v170_v5, %v169_v2  ;;  %v356_v10 = vpack.c.bf16 (!%p137_p2), %v172_v9, %v171_v8  ;;  %v173_v11 = vld [vmem:[%s448_s1 + $0x30] sm:$0xff] (!%p137_p2)  ;;  %v174_v12 = vld [vmem:[%s448_s1 + $0x38] sm:$0xff] (!%p137_p2)  ;;  %v317_v15 = vld [vmem:[%s449_s2] ss:$0 sm:$0xff] (!%p137_p2) }
   0x8   : > { %351 = vmatpush3.bf16.msra.mxu0 (!%p137_p2), %v350_v4  ;;  %v359_v13 = vpack.c.bf16 (!%p137_p2), %v174_v12, %v173_v11 }
   0x9   : > { %352 = vmatprep.subr.bf16.mxu0 (!%p137_p2), %v380_v3 }
   0xc   : > { %354 = vmatpush3.bf16.msra.mxu0 (!%p137_p2), %v353_v7 }
   0xd   : > { %s452_s13 = smov (!%p158_p3, %s310_s13), 1  ;;  %355 = vmatprep.subr.bf16.mxu0 %v380_v3 }
   0xe   : > { %s315_s30 = sshll.u32 %s452_s13, 3 }
   0xf   : > { %s161_s6 = scalar_lea.vmem %s447_s0, %s315_s30  ;;  %s165_s11 = scalar_lea.vmem %s450_s3, %s315_s30 }
  0x10   : > { %357 = vmatpush3.bf16.msra.mxu0 %v356_v10  ;;  %v166_v14 = vld [vmem:[%s161_s6] sm:$0xff] }
  0x11   : > { %358 = vmatprep.subr.bf16.mxu0 %v380_v3 }
  0x14   : > { %360 = vmatpush3.bf16.msra.mxu0 %v359_v13 }
  0x17   : > { %347 = vmatmul.mubr.msk.f32.vlgmr.msra.gmra.mrb[0].mxu0 %vm182_vm1, %v166_v14 }
  0xea   : > { %v252_v16 = vpop.f32.mrb[0].mxu0 }
  0xeb   : > { %v253_v17 = vadd.f32 %v317_v15, %v252_v16  ;;  %v348_v18 = vpop.f32.mrb[1].mxu0 }
  0xed   : > { %256 = vst [vmem:[%s165_s11] sm:$0xff] %v253_v17 }
  0xee PF: > { %s13_s12 = sadd.s32 1, %s378_s12  }
  0xef   : > { %p10_p4 = scmp.ge.s32.totalorder %s13_s12, 4  }
  0xf1   :  { %12 = sbr.rel (!%p10_p4) target bundleno = 1 (0x1), region = 62 }

// kernel: encoder_forward.7
= control target key start
LH: loop header
LB: loop body
LE: loop exit
PB: predicated region body
PF: predicated region fallthrough
CT: control target
= control target key end

     0   :  { %s3296_s17 = smov 0   ;;  %s3855_s0 = inlined_call_operand.vmem [shape: f32[2,8,64], index: 0, kind: input, shape index: {}]   ;;  %s3856_s1 = inlined_call_operand.vmem [shape: f32[4,64,16], index: 1, kind: input, shape index: {}]   ;;  %s3857_s2 = inlined_call_operand.vmem [shape: f32[4,1,16], index: 2, kind: input, shape index: {}]   ;;  %s3858_s3 = inlined_call_operand.vmem [shape: f32[4,64,16], index: 3, kind: input, shape index: {}]   ;;  %s3859_s4 = inlined_call_operand.vmem [shape: f32[4,1,16], index: 4, kind: input, shape index: {}]   ;;  %s3860_s5 = inlined_call_operand.vmem [shape: f32[4,64,16], index: 5, kind: input, shape index: {}]   ;;  %s3861_s6 = inlined_call_operand.vmem [shape: f32[4,1,16], index: 6, kind: input, shape index: {}]   ;;  %s3862_s7 = inlined_call_operand.vmem [shape: f32[4,16,64], index: 7, kind: input, shape index: {}]   ;;  %s3863_s8 = inlined_call_operand.vmem [shape: f32[1,64], index: 8, kind: input, shape index: {}]   ;;  %s3864_s9 = inlined_call_operand.vmem [shape: f32[1,64], index: 9, kind: input, shape index: {}]   ;;  %s3865_s10 = inlined_call_operand.vmem [shape: f32[1,64], index: 10, kind: input, shape index: {}]   ;;  %s3866_s11 = inlined_call_operand.vmem [shape: f32[2,8,64], index: 11, kind: output, shape index: {}]  }
   0x1 LB: > { %s2469_s18 = sadd.s32 4294967295, %s3231_s17   ;;  %p2473_p0 = scmp.ge.s32.totalorder %s3231_s17, 1  ;;  %s3231_s17 = sphi %s3296_s17, %s21_s17  }
   0x2   : > { %p336_p1 = scmp.lt.s32.totalorder %s3231_s17, 3 }
   0x4   : > { %p337_p2 = pnand %p2473_p0, %p336_p1 }
   0x5   : > { %v473_v0 = vld [vmem:[%s3858_s3] sm:$0xff] (!%p337_p2)  ;;  %v474_v1 = vld [vmem:[%s3858_s3 + $0x8] sm:$0xff] (!%p337_p2)  ;;  %v3233_v3 = vmov (!%p337_p2), 0.0|0.0   ;;  %v475_v6 = vld [vmem:[%s3858_s3 + $0x10] sm:$0xff] (!%p337_p2)  ;;  %p3326_p3 = scmp.lt.s32.totalorder (!%p337_p2), %s2469_s18, 1  ;;  %vm3234_vm0 = vmmov (!%p337_p2), 0  }
   0x6   : > { %340 = sbr.rel (%p337_p2) target bundleno = 4208 (0x1070), region = 64  ;;  %v383_v2 = vld [vmem:[%s3856_s1] sm:$0xff] (!%p337_p2)  ;;  %3052 = vmatprep.subr.bf16.mxu1 (!%p337_p2), %v3233_v3  ;;  %3040 = vmatprep.subr.bf16.mxu0 (!%p337_p2), %v3233_v3  ;;  %v3053_v4 = vpack.c.bf16 (!%p337_p2), %v474_v1, %v473_v0  ;;  %v384_v5 = vld [vmem:[%s3856_s1 + $0x8] sm:$0xff] (!%p337_p2)  ;;  %v476_v7 = vld [vmem:[%s3858_s3 + $0x18] sm:$0xff] (!%p337_p2)  ;;  %v3235_v11 = vmov (!%p337_p2), 0.0   ;;  %vm398_vm1 = vcmask (!%p337_p2), 523264  }
   0x7   : > { %v3041_v8 = vpack.c.bf16 (!%p337_p2), %v384_v5, %v383_v2  ;;  %v385_v9 = vld [vmem:[%s3856_s1 + $0x10] sm:$0xff] (!%p337_p2)  ;;  %v386_v10 = vld [vmem:[%s3856_s1 + $0x18] sm:$0xff] (!%p337_p2)  ;;  %2779 = vmatprep.mubr.msk.f32.mxu1 (!%p337_p2), %vm3234_vm0, %v3235_v11  ;;  %2760 = vmatprep.mubr.msk.f32.mxu0 (!%p337_p2), %vm3234_vm0, %v3235_v11  ;;  %v3056_v12 = vpack.c.bf16 (!%p337_p2), %v476_v7, %v475_v6  ;;  %v477_v14 = vld [vmem:[%s3858_s3 + $0x20] sm:$0xff] (!%p337_p2)  ;;  %vm643_vm2 = vcmask (!%p337_p2), 130048   ;;  %vm720_vm3 = vcmask (!%p337_p2), 64512  }
   0x8   : > { %3054 = vmatpush3.bf16.msra.mxu1 (!%p337_p2), %v3053_v4  ;;  %v3044_v13 = vpack.c.bf16 (!%p337_p2), %v386_v10, %v385_v9  ;;  %v478_v15 = vld [vmem:[%s3858_s3 + $0x28] sm:$0xff] (!%p337_p2)  ;;  %v387_v16 = vld [vmem:[%s3856_s1 + $0x20] sm:$0xff] (!%p337_p2)  ;;  %v479_v20 = vld [vmem:[%s3858_s3 + $0x30] sm:$0xff] (!%p337_p2) }
   0x9   : > { %3042 = vmatpush3.bf16.msra.mxu0 (!%p337_p2), %v3041_v8  ;;  %3055 = vmatprep.subr.bf16.mxu1 (!%p337_p2), %v3233_v3  ;;  %v388_v17 = vld [vmem:[%s3856_s1 + $0x28] sm:$0xff] (!%p337_p2)  ;;  %v3059_v18 = vpack.c.bf16 (!%p337_p2), %v478_v15, %v477_v14  ;;  %v480_v21 = vld [vmem:[%s3858_s3 + $0x38] sm:$0xff] (!%p337_p2)  ;;  %v389_v22 = vld [vmem:[%s3856_s1 + $0x30] sm:$0xff] (!%p337_p2) }
   0xa   : > { %3043 = vmatprep.subr.bf16.mxu0 (!%p337_p2), %v3233_v3  ;;  %v3047_v19 = vpack.c.bf16 (!%p337_p2), %v388_v17, %v387_v16  ;;  %v390_v23 = vld [vmem:[%s3856_s1 + $0x38] sm:$0xff] (!%p337_p2)  ;;  %v3062_v24 = vpack.c.bf16 (!%p337_p2), %v480_v21, %v479_v20  ;;  %v2478_v27 = vld [vmem:[%s3859_s4] ss:$0 sm:$0xff] (!%p337_p2)  ;;  %v559_v37 = vld [vmem:[%s3860_s5 + $0x8] sm:$0xff] (!%p337_p2) }
   0xb   : > { %v3050_v25 = vpack.c.bf16 (!%p337_p2), %v390_v23, %v389_v22  ;;  %v2476_v28 = vld [vmem:[%s3857_s2] ss:$0 sm:$0xff] (!%p337_p2)  ;;  %v560_v38 = vld [vmem:[%s3860_s5 + $0x10] sm:$0xff] (!%p337_p2)  ;;  %v561_v40 = vld [vmem:[%s3860_s5 + $0x18] sm:$0xff] (!%p337_p2) }
   0xc   : > { %3057 = vmatpush3.bf16.msra.mxu1 (!%p337_p2), %v3056_v12  ;;  %v558_v36 = vld [vmem:[%s3860_s5] sm:$0xff] (!%p337_p2)  ;;  %v3068_v41 = vpack.c.bf16 (!%p337_p2), %v561_v40, %v560_v38  ;;  %v563_v43 = vld [vmem:[%s3860_s5 + $0x28] sm:$0xff] (!%p337_p2)  ;;  %v564_v45 = vld [vmem:[%s3860_s5 + $0x30] sm:$0xff] (!%p337_p2) }
   0xd   : > { %s3869_s18 = smov (!%p3326_p3, %s2469_s18), 1  ;;  %3045 = vmatpush3.bf16.msra.mxu0 %v3044_v13  ;;  %3058 = vmatprep.subr.bf16.mxu1 %v3233_v3  ;;  %v3065_v39 = vpack.c.bf16 %v559_v37, %v558_v36  ;;  %v562_v42 = vld [vmem:[%s3860_s5 + $0x20] sm:$0xff]  ;;  %v565_v46 = vld [vmem:[%s3860_s5 + $0x38] sm:$0xff]  ;;  %v2497_v60 = vld [vmem:[%s3858_s3 + $0x48] sm:$0xff] }
   0xe   : > { %3046 = vmatprep.subr.bf16.mxu0 %v3233_v3  ;;  %s2474_s16 = sshll.u32 %s3869_s18, 3  ;;  %v3071_v44 = vpack.c.bf16 %v563_v43, %v562_v42  ;;  %v3074_v47 = vpack.c.bf16 %v565_v46, %v564_v45  ;;  %v2480_v57 = vld [vmem:[%s3861_s6] ss:$0 sm:$0xff]  ;;  %v2498_v63 = vld [vmem:[%s3858_s3 + $0x50] sm:$0xff]  ;;  %v2499_v0 = vld [vmem:[%s3858_s3 + $0x58] sm:$0xff] }
   0xf   : > { %s377_s21 = scalar_lea.vmem %s3855_s0, %s2474_s16  ;;  %v2496_v59 = vld [vmem:[%s3858_s3 + $0x40] sm:$0xff]  ;;  %v3092_v1 = vpack.c.bf16 %v2499_v0, %v2498_v63  ;;  %v2501_v4 = vld [vmem:[%s3858_s3 + $0x68] sm:$0xff]  ;;  %v2502_v6 = vld [vmem:[%s3858_s3 + $0x70] sm:$0xff]  ;;  %s381_s22 = scalar_lea.vmem %s3866_s11, %s2474_s16 }
  0x10   : > { %3060 = vmatpush3.bf16.msra.mxu1 %v3059_v18  ;;  %v3382_v26 = vld [vmem:[%s377_s21] sm:$0xff]  ;;  %v3089_v62 = vpack.c.bf16 %v2497_v60, %v2496_v59  ;;  %v2503_v7 = vld [vmem:[%s3858_s3 + $0x78] sm:$0xff]  ;;  %v2486_v12 = vld [vmem:[%s3856_s1 + $0x48] sm:$0xff] }
  0x11   : > { %3048 = vmatpush3.bf16.msra.mxu0 %v3047_v19  ;;  %3061 = vmatprep.subr.bf16.mxu1 %v3233_v3  ;;  %v2500_v2 = vld [vmem:[%s3858_s3 + $0x60] sm:$0xff]  ;;  %v3098_v8 = vpack.c.bf16 %v2503_v7, %v2502_v6  ;;  %v2487_v16 = vld [vmem:[%s3856_s1 + $0x50] sm:$0xff]  ;;  %v2488_v17 = vld [vmem:[%s3856_s1 + $0x58] sm:$0xff] }
  0x12   : > { %3049 = vmatprep.subr.bf16.mxu0 %v3233_v3  ;;  %v3095_v5 = vpack.c.bf16 %v2501_v4, %v2500_v2  ;;  %v2485_v10 = vld [vmem:[%s3856_s1 + $0x40] sm:$0xff]  ;;  %v3080_v18 = vpack.c.bf16 %v2488_v17, %v2487_v16  ;;  %v2490_v20 = vld [vmem:[%s3856_s1 + $0x68] sm:$0xff]  ;;  %v2491_v22 = vld [vmem:[%s3856_s1 + $0x70] sm:$0xff] }
  0x13   : > { %v3077_v14 = vpack.c.bf16 %v2486_v12, %v2485_v10  ;;  %v2489_v19 = vld [vmem:[%s3856_s1 + $0x60] sm:$0xff]  ;;  %v2492_v23 = vld [vmem:[%s3856_s1 + $0x78] sm:$0xff]  ;;  %v2537_v4 = vld [vmem:[%s3858_s3 + $0x88] sm:$0xff] }
  0x14   : > { %3063 = vmatpush3.bf16.msra.mxu1 %v3062_v24  ;;  %v3083_v21 = vpack.c.bf16 %v2490_v20, %v2489_v19  ;;  %v3086_v24 = vpack.c.bf16 %v2492_v23, %v2491_v22  ;;  %v2514_v36 = vld [vmem:[%s3860_s5 + $0x78] sm:$0xff]  ;;  %v805_v38 = vld [vmem:[%s3862_s7] sm:$0xff]  ;;  %v2521_v7 = vld [vmem:[%s3862_s7 + $0x10] sm:$0xff] }
  0x15   : > { %3051 = vmatpush3.bf16.msra.mxu0 %v3050_v25  ;;  %2801 = vmatprep.subr.mxu1 %v3235_v11  ;;  %v2507_v25 = vld [vmem:[%s3860_s5 + $0x40] sm:$0xff]  ;;  %v2541_v17 = vld [vmem:[%s3858_s3 + $0xa8] sm:$0xff]  ;;  %v2542_v19 = vld [vmem:[%s3858_s3 + $0xb0] sm:$0xff] }
  0x16   : > { %3064 = vmatprep.subr.bf16.mxu0 %v3233_v3  ;;  %v2536_v2 = vld [vmem:[%s3858_s3 + $0x80] sm:$0xff]  ;;  %v2543_v20 = vld [vmem:[%s3858_s3 + $0xb8] sm:$0xff]  ;;  %v2526_v23 = vld [vmem:[%s3856_s1 + $0x88] sm:$0xff] }
  0x17   : > { %2780 = vmatmul.mubr.msk.f32.vlgmr.msra.gmra.mrb[0].mxu1 %vm398_vm1, %v3382_v26  ;;  %v2540_v16 = vld [vmem:[%s3858_s3 + $0xa0] sm:$0xff] }
  0x18   : > { %2761 = vmatmul.mubr.msk.f32.vlgmr.msra.gmra.mrb[0].mxu0 %vm398_vm1, %v3382_v26  ;;  %2803 = vmatprep.mubr.msk.f32.mxu1 %vm3234_vm0, %v3235_v11  ;;  %v2525_v22 = vld [vmem:[%s3856_s1 + $0x80] sm:$0xff] }
  0x19   : > { %2798 = vmatprep.mubr.msk.f32.mxu0 %vm3234_vm0, %v3235_v11  ;;  %3066 = vmatpush3.bf16.msra.mxu0 %v3065_v39  ;;  %v806_v39 = vld [vmem:[%s3862_s7 + $0x8] sm:$0xff] }
  0x1a   : > { %3067 = vmatprep.subr.bf16.mxu0 %v3233_v3  ;;  %v3116_v40 = vpack.c.bf16 %v806_v39, %v805_v38 }
  0x1d   : > { %3069 = vmatpush3.bf16.msra.mxu0 %v3068_v41  ;;  %v2505_v41 = vld [vmem:[%s3859_s4 + $0x1] ss:$0 sm:$0xff] }
  0x1e   : > { %3070 = vmatprep.subr.bf16.mxu0 %v3233_v3 }
  0x21   : > { %3072 = vmatpush3.bf16.msra.mxu0 %v3071_v44 }
  0x22   : > { %3073 = vmatprep.subr.bf16.mxu0 %v3233_v3 }
  0x25   : > { %3075 = vmatpush3.bf16.msra.mxu0 %v3074_v47  ;;  %v2494_v47 = vld [vmem:[%s3857_s2 + $0x1] ss:$0 sm:$0xff] }
  0x26   : > { %3088 = vmatprep.subr.bf16.mxu0 %v3233_v3 }
  0x28   : > { %2799 = vmatmul.mubr.msk.f32.vlgmr.msra.gmra.mrb[2].mxu0 %vm398_vm1, %v3382_v26 }
  0x29   : > { %2846 = vmatprep.mubr.msk.f32.mxu0 %vm3234_vm0, %v3235_v11  ;;  %3090 = vmatpush3.bf16.msra.mxu0 %v3089_v62 }
  0x2a   : > { %3091 = vmatprep.subr.bf16.mxu0 %v3233_v3 }
  0x2d   : > { %3093 = vmatpush3.bf16.msra.mxu0 %v3092_v1 }
  0x2e   : > { %3094 = vmatprep.subr.bf16.mxu0 %v3233_v3 }
  0x31   : > { %3096 = vmatpush3.bf16.msra.mxu0 %v3095_v5  ;;  %v3131_v5 = vpack.c.bf16 %v2537_v4, %v2536_v2 }
  0x32   : > { %3097 = vmatprep.subr.bf16.mxu0 %v3233_v3 }
  0x35   : > { %3099 = vmatpush3.bf16.msra.mxu0 %v3098_v8  ;;  %v2522_v8 = vld [vmem:[%s3862_s7 + $0x18] sm:$0xff] }
  0x36   : > { %2868 = vmatprep.subr.mxu0 %v3235_v11  ;;  %v3113_v10 = vpack.c.bf16 %v2522_v8, %v2521_v7  ;;  %v2556_v7 = vld [vmem:[%s3861_s6 + $0x2] ss:$0 sm:$0xff] }
  0x38   : > { %2847 = vmatmul.mubr.msk.f32.vlgmr.msra.gmra.mrb[4].mxu0 %vm398_vm1, %v3382_v26 }
  0x39   : > { %2870 = vmatprep.mubr.msk.f32.mxu0 %vm3234_vm0, %v3235_v11 }
  0xea   : > { %v554_v29 = vpop.f32.mrb[0].mxu1 }
  0xeb   : > { %v555_v30 = vadd.f32 %v2478_v27, %v554_v29  ;;  %v468_v31 = vpop.f32.mrb[0].mxu0  ;;  %v2781_v32 = vpop.f32.mrb[1].mxu1  ;;  %v2508_v27 = vld [vmem:[%s3860_s5 + $0x48] sm:$0xff]  ;;  %v2509_v29 = vld [vmem:[%s3860_s5 + $0x50] sm:$0xff] }
  0xec   : > { %v469_v33 = vadd.f32 %v2476_v28, %v468_v31  ;;  %v2762_v34 = vpop.f32.mrb[1].mxu0  ;;  %v3101_v28 = vpack.c.bf16 %v2508_v27, %v2507_v25  ;;  %v2511_v32 = vld [vmem:[%s3860_s5 + $0x60] sm:$0xff]  ;;  %v2527_v25 = vld [vmem:[%s3856_s1 + $0x90] sm:$0xff]  ;;  %v2528_v27 = vld [vmem:[%s3856_s1 + $0x98] sm:$0xff] }
  0xed   : > { %2802 = vmatpush3.xpose.msk.msra.mxu1 %vm643_vm2, %v555_v30  ;;  %v2510_v30 = vld [vmem:[%s3860_s5 + $0x58] sm:$0xff] }
  0xee   : > { %v472_v35 = vmul.f32 0.25, %v469_v33  ;;  %2806 = vmatprep.subr.mxu1 %v3235_v11  ;;  %v3104_v31 = vpack.c.bf16 %v2510_v30, %v2509_v29  ;;  %v2512_v33 = vld [vmem:[%s3860_s5 + $0x68] sm:$0xff]  ;;  %v3122_v30 = vpack.c.bf16 %v2528_v27, %v2527_v25  ;;  %v2581_v27 = vld [vmem:[%s3858_s3 + $0xf0] sm:$0xff] }
  0xef   : > { %v3107_v34 = vpack.c.bf16 %v2512_v33, %v2511_v32  ;;  %v2530_v32 = vld [vmem:[%s3856_s1 + $0xa8] sm:$0xff] }
  0xf0   : > { %2804 = vmatmul.mubr.msk.f32.vlgmr.msra.gmra.mrb[2].mxu1 %vm643_vm2, %v472_v35  ;;  %v2513_v35 = vld [vmem:[%s3860_s5 + $0x70] sm:$0xff] }
  0xf1   : > { %2808 = vmatprep.mubr.msk.f32.mxu1 %vm3234_vm0, %v3235_v11  ;;  %v3110_v37 = vpack.c.bf16 %v2514_v36, %v2513_v35  ;;  %v2532_v35 = vld [vmem:[%s3856_s1 + $0xb8] sm:$0xff] }
  0xfb   : > { %v639_v56 = vpop.f32.mrb[2].mxu0 }
  0xfc   : > { %v2800_v58 = vpop.f32.mrb[3].mxu0  ;;  %v640_v61 = vadd.f32 %v2480_v57, %v639_v56 }
  0xfe   : > { %2807 = vmatpush3.msra.mxu1 %v640_v61 }
  0xff   : > { %3076 = vmatprep.subr.bf16.mxu1 %v3233_v3 }
 0x10b   : > { %v978_v42 = vpop.f32.mrb[4].mxu0 }
 0x10c   : > { %v979_v43 = vadd.f32 %v2505_v41, %v978_v42  ;;  %v2848_v44 = vpop.f32.mrb[5].mxu0 }
 0x10d   : > { %v2534_v44 = vld [vmem:[%s3857_s2 + $0x2] ss:$0 sm:$0xff] }
 0x10e   : > { %2869 = vmatpush3.xpose.msk.msra.mxu0 %vm643_vm2, %v979_v43 }
 0x10f   : > { %2873 = vmatprep.subr.mxu0 %v3235_v11 }
 0x1c3   : > { %v716_v48 = vpop.f32.mrb[2].mxu1 }
 0x1c4   : > { %v2805_v49 = vpop.f32.mrb[3].mxu1  ;;  %v721_v50 = vsel %vm720_vm3, %v716_v48, -inf }
 0x1c5   : > { %722 = vmax.xlane.f32.xlu0 %v721_v50 }
 0x252   : > { %v723_v51 = vpop.xlane.xlu0 %722 }
 0x253   : > { %v724_v52 = vsub.f32 %v716_v48, %v723_v51 }
 0x255   : > { %v725_v53 = vmul.f32 1.442695, %v724_v52  ;;  %v2516_v52 = vld [vmem:[%s3861_s6 + $0x1] ss:$0 sm:$0xff] }
 0x257   : > { %3207 = vpow2.f32 %v725_v53 }
 0x261   : > { %v3208_v54 = vpop.eup %3207 }
 0x262   : > { %v727_v55 = vsel %vm720_vm3, %v3208_v54, 0.0 }
 0x263   : > { %728 = vadd.xlane.f32.xlu0 %v727_v55 }
 0x2f0   : > { %v729_v9 = vpop.xlane.xlu0 %728 }
 0x2f1   : > { %3209 = vrcp.f32 %v729_v9 }
 0x2fb   : > { %v3210_v13 = vpop.eup %3209 }
 0x2fc   : > { %v731_v15 = vmul.f32 %v3210_v13, %v3208_v54  ;;  %v2538_v13 = vld [vmem:[%s3858_s3 + $0x90] sm:$0xff] }
 0x2fe   : > { %2809 = vmatmul.mubr.msk.f32.vlgmr.msra.gmra.mrb[4].mxu1 %vm720_vm3, %v731_v15 }
 0x2ff   : > { %3078 = vmatpush3.bf16.msra.mxu1 %v3077_v14  ;;  %2827 = vmatprep.mubr.msk.f32.mxu1 %vm3234_vm0, %v3235_v11  ;;  %v2539_v14 = vld [vmem:[%s3858_s3 + $0x98] sm:$0xff] }
 0x300   : > { %3079 = vmatprep.subr.bf16.mxu1 %v3233_v3  ;;  %v3134_v15 = vpack.c.bf16 %v2539_v14, %v2538_v13 }
 0x303   : > { %3081 = vmatpush3.bf16.msra.mxu1 %v3080_v18  ;;  %v3137_v18 = vpack.c.bf16 %v2541_v17, %v2540_v16  ;;  %v2562_v16 = vld [vmem:[%s3862_s7 + $0x28] sm:$0xff] }
 0x304   : > { %3082 = vmatprep.subr.bf16.mxu1 %v3233_v3 }
 0x307   : > { %3084 = vmatpush3.bf16.msra.mxu1 %v3083_v21  ;;  %v3140_v21 = vpack.c.bf16 %v2543_v20, %v2542_v19  ;;  %v2577_v20 = vld [vmem:[%s3858_s3 + $0xd0] sm:$0xff] }
 0x308   : > { %3085 = vmatprep.subr.bf16.mxu1 %v3233_v3 }
 0x30b   : > { %3087 = vmatpush3.bf16.msra.mxu1 %v3086_v24  ;;  %v3119_v24 = vpack.c.bf16 %v2526_v23, %v2525_v22  ;;  %v2579_v23 = vld [vmem:[%s3858_s3 + $0xe0] sm:$0xff] }
 0x30c   : > { %3100 = vmatprep.subr.bf16.mxu1 %v3233_v3 }
 0x30e   : > { %2828 = vmatmul.mubr.msk.f32.vlgmr.msra.gmra.mrb[6].mxu1 %vm398_vm1, %v3382_v26 }
 0x30f   : > { %3102 = vmatpush3.bf16.msra.mxu1 %v3101_v28  ;;  %2865 = vmatprep.mubr.msk.f32.mxu1 %vm3234_vm0, %v3235_v11 }
 0x310   : > { %3103 = vmatprep.subr.bf16.mxu1 %v3233_v3 }
 0x313   : > { %3105 = vmatpush3.bf16.msra.mxu1 %v3104_v31  ;;  %v2529_v31 = vld [vmem:[%s3856_s1 + $0xa0] sm:$0xff] }
 0x314   : > { %3106 = vmatprep.subr.bf16.mxu1 %v3233_v3  ;;  %v3125_v33 = vpack.c.bf16 %v2530_v32, %v2529_v31  ;;  %v2565_v31 = vld [vmem:[%s3856_s1 + $0xc8] sm:$0xff] }
 0x317   : > { %3108 = vmatpush3.bf16.msra.mxu1 %v3107_v34  ;;  %v2531_v34 = vld [vmem:[%s3856_s1 + $0xb0] sm:$0xff] }
 0x318   : > { %3109 = vmatprep.subr.bf16.mxu1 %v3233_v3  ;;  %v3128_v36 = vpack.c.bf16 %v2532_v35, %v2531_v34  ;;  %v2567_v34 = vld [vmem:[%s3856_s1 + $0xd8] sm:$0xff] }
 0x31b   : > { %3111 = vmatpush3.bf16.msra.mxu1 %v3110_v37  ;;  %v2545_v37 = vld [vmem:[%s3859_s4 + $0x2] ss:$0 sm:$0xff] }
 0x31c   : > { %3115 = vmatprep.subr.bf16.mxu1 %v3233_v3 }
 0x31e   : > { %2866 = vmatmul.mubr.msk.f32.vlgmr.msra.gmra.mrb[8].mxu1 %vm398_vm1, %v3382_v26 }
 0x31f   : > { %3117 = vmatpush3.bf16.msra.mxu1 %v3116_v40  ;;  %2889 = vmatprep.mubr.msk.f32.mxu1 %vm3234_vm0, %v3235_v11 }
 0x320   : > { %3130 = vmatprep.subr.bf16.mxu1 %v3233_v3 }
 0x3d1   : > { %v801_v45 = vpop.f32.mrb[4].mxu1 }
 0x3d2   : > { %v2810_v46 = vpop.f32.mrb[5].mxu1  ;;  %2890 = vmatmul.mubr.msk.f32.vlgmr.msra.gmra.mrb[10].mxu1 %vm643_vm2, %v801_v45 }
 0x3d3   : > { %2927 = vmatprep.mubr.msk.f32.mxu1 %vm3234_vm0, %v3235_v11  ;;  %3132 = vmatpush3.bf16.msra.mxu1 %v3131_v5 }
 0x3d4   : > { %3133 = vmatprep.subr.bf16.mxu1 %v3233_v3 }
 0x3d7   : > { %3135 = vmatpush3.bf16.msra.mxu1 %v3134_v15  ;;  %v2561_v15 = vld [vmem:[%s3862_s7 + $0x20] sm:$0xff] }
 0x3d8   : > { %3136 = vmatprep.subr.bf16.mxu1 %v3233_v3 }
 0x3db   : > { %3138 = vmatpush3.bf16.msra.mxu1 %v3137_v18  ;;  %v3155_v18 = vpack.c.bf16 %v2562_v16, %v2561_v15  ;;  %v2595_v15 = vld [vmem:[%s3861_s6 + $0x3] ss:$0 sm:$0xff] }
 0x3dc   : > { %3139 = vmatprep.subr.bf16.mxu1 %v3233_v3 }
 0x3df   : > { %3141 = vmatpush3.bf16.msra.mxu1 %v3140_v21  ;;  %v2578_v21 = vld [vmem:[%s3858_s3 + $0xd8] sm:$0xff] }
 0x3e0   : > { %2949 = vmatprep.subr.mxu1 %v3235_v11  ;;  %v3173_v22 = vpack.c.bf16 %v2578_v21, %v2577_v20  ;;  %v2601_v20 = vld [vmem:[%s3862_s7 + $0x38] sm:$0xff] }
 0x3e1   : > { %v890_v48 = vpop.f32.mrb[6].mxu1 }
 0x3e2   : > { %v891_v49 = vadd.f32 %v2494_v47, %v890_v48  ;;  %v2829_v50 = vpop.f32.mrb[7].mxu1  ;;  %2928 = vmatmul.mubr.msk.f32.vlgmr.msra.gmra.mrb[12].mxu1 %vm398_vm1, %v3382_v26 }
 0x3e3   : > { %2951 = vmatprep.mubr.msk.f32.mxu1 %vm3234_vm0, %v3235_v11  ;;  %v2548_v50 = vld [vmem:[%s3860_s5 + $0x88] sm:$0xff] }
 0x3e4   : > { %v894_v51 = vmul.f32 0.25, %v891_v49  ;;  %v2547_v49 = vld [vmem:[%s3860_s5 + $0x80] sm:$0xff] }
 0x3e6   : > { %2871 = vmatmul.mubr.msk.f32.vlgmr.msra.gmra.mrb[6].mxu0 %vm643_vm2, %v894_v51  ;;  %v2549_v51 = vld [vmem:[%s3860_s5 + $0x90] sm:$0xff] }
 0x3e7   : > { %2875 = vmatprep.mubr.msk.f32.mxu0 %vm3234_vm0, %v3235_v11 }
 0x3f1   : > { %v1065_v53 = vpop.f32.mrb[8].mxu1 }
 0x3f2   : > { %v1066_v54 = vadd.f32 %v2516_v52, %v1065_v53  ;;  %v2867_v55 = vpop.f32.mrb[9].mxu1  ;;  %v3143_v52 = vpack.c.bf16 %v2548_v50, %v2547_v49  ;;  %v2550_v53 = vld [vmem:[%s3860_s5 + $0x98] sm:$0xff] }
 0x3f3   : > { %v2551_v55 = vld [vmem:[%s3860_s5 + $0xa0] sm:$0xff] }
 0x3f4   : > { %2874 = vmatpush3.msra.mxu0 %v1066_v54  ;;  %v3146_v54 = vpack.c.bf16 %v2550_v53, %v2549_v51 }
 0x3f5   : > { %3112 = vmatprep.subr.bf16.mxu0 %v3233_v3 }
 0x4a5   : > { %v3567_v56 = vpop.f32.mrb[10].mxu1 }
 0x4a6   : > { %v2891_v57 = vpop.f32.mrb[11].mxu1 }
 0x4b5   : > { %v1549_v38 = vpop.f32.mrb[12].mxu1 }
 0x4b6   : > { %v1550_v39 = vadd.f32 %v2545_v37, %v1549_v38  ;;  %v2929_v40 = vpop.f32.mrb[13].mxu1  ;;  %v2568_v38 = vld [vmem:[%s3856_s1 + $0xe0] sm:$0xff] }
 0x4b8   : > { %2950 = vmatpush3.xpose.msk.msra.mxu1 %vm643_vm2, %v1550_v39  ;;  %v2569_v39 = vld [vmem:[%s3856_s1 + $0xe8] sm:$0xff] }
 0x4b9   : > { %v1141_v58 = vpop.f32.mrb[6].mxu0  ;;  %2954 = vmatprep.subr.mxu1 %v3235_v11  ;;  %v3164_v40 = vpack.c.bf16 %v2569_v39, %v2568_v38 }
 0x4ba   : > { %v2872_v59 = vpop.f32.mrb[7].mxu0  ;;  %v1145_v60 = vsel %vm720_vm3, %v1141_v58, -inf }
 0x4bb   : > { %1146 = vmax.xlane.f32.xlu1 %v1145_v60  ;;  %v2554_v59 = vld [vmem:[%s3860_s5 + $0xb8] sm:$0xff] }
 0x548   : > { %v1147_v61 = vpop.xlane.xlu1 %1146 }
 0x549   : > { %v1148_v62 = vsub.f32 %v1141_v58, %v1147_v61  ;;  %v2553_v58 = vld [vmem:[%s3860_s5 + $0xb0] sm:$0xff] }
 0x54a   : > { %v3152_v60 = vpack.c.bf16 %v2554_v59, %v2553_v58  ;;  %v2588_v58 = vld [vmem:[%s3860_s5 + $0xd0] sm:$0xff] }
 0x54b   : > { %v1149_v63 = vmul.f32 1.442695, %v1148_v62 }
 0x54d   : > { %3211 = vpow2.f32 %v1149_v63 }
 0x557   : > { %v3212_v0 = vpop.eup %3211 }
 0x558   : > { %v1151_v1 = vsel %vm720_vm3, %v3212_v0, 0.0 }
 0x559   : > { %1152 = vadd.xlane.f32.xlu1 %v1151_v1 }
 0x5e6   : > { %v1153_v6 = vpop.xlane.xlu1 %1152 }
 0x5e7   : > { %3213 = vrcp.f32 %v1153_v6 }
 0x5f1   : > { %v3214_v9 = vpop.eup %3213 }
 0x5f2   : > { %v1155_v12 = vmul.f32 %v3214_v9, %v3212_v0 }
 0x5f4   : > { %2876 = vmatmul.mubr.msk.f32.vlgmr.msra.gmra.mrb[8].mxu0 %vm720_vm3, %v1155_v12  ;;  %v2576_v12 = vld [vmem:[%s3858_s3 + $0xc8] sm:$0xff] }
 0x5f5   : > { %3114 = vmatpush3.bf16.msra.mxu0 %v3113_v10  ;;  %2882 = vmatprep.mubr.msk.f32.mxu0 %vm3234_vm0, %v3235_v11  ;;  %v2575_v10 = vld [vmem:[%s3858_s3 + $0xc0] sm:$0xff] }
 0x5f6   : > { %3118 = vmatprep.subr.bf16.mxu0 %v3233_v3  ;;  %v3170_v13 = vpack.c.bf16 %v2576_v12, %v2575_v10 }
 0x6c7   : > { %v1225_v28 = vpop.f32.mrb[8].mxu0 }
 0x6c8   : > { %v2877_v29 = vpop.f32.mrb[9].mxu0  ;;  %2883 = vmatmul.mubr.msk.f32.vlgmr.msra.gmra.mrb[10].mxu0 %vm643_vm2, %v1225_v28  ;;  %v2582_v28 = vld [vmem:[%s3858_s3 + $0xf8] sm:$0xff] }
 0x6c9   : > { %3120 = vmatpush3.bf16.msra.mxu0 %v3119_v24  ;;  %2908 = vmatprep.mubr.msk.f32.mxu0 %vm3234_vm0, %v3235_v11  ;;  %v2580_v24 = vld [vmem:[%s3858_s3 + $0xe8] sm:$0xff]  ;;  %v3179_v29 = vpack.c.bf16 %v2582_v28, %v2581_v27 }
 0x6ca   : > { %3121 = vmatprep.subr.bf16.mxu0 %v3233_v3  ;;  %v3176_v25 = vpack.c.bf16 %v2580_v24, %v2579_v23 }
 0x6cd   : > { %3123 = vmatpush3.bf16.msra.mxu0 %v3122_v30  ;;  %v2564_v30 = vld [vmem:[%s3856_s1 + $0xc0] sm:$0xff] }
 0x6ce   : > { %3124 = vmatprep.subr.bf16.mxu0 %v3233_v3  ;;  %v3158_v32 = vpack.c.bf16 %v2565_v31, %v2564_v30 }
 0x6d1   : > { %3126 = vmatpush3.bf16.msra.mxu0 %v3125_v33  ;;  %v2566_v33 = vld [vmem:[%s3856_s1 + $0xd0] sm:$0xff] }
 0x6d2   : > { %3127 = vmatprep.subr.bf16.mxu0 %v3233_v3  ;;  %v3161_v37 = vpack.c.bf16 %v2567_v34, %v2566_v33 }
 0x6d5   : > { %3129 = vmatpush3.bf16.msra.mxu0 %v3128_v36 }
 0x6d6   : > { %3142 = vmatprep.subr.bf16.mxu0 %v3233_v3 }
 0x6d8   : > { %2909 = vmatmul.mubr.msk.f32.vlgmr.msra.gmra.mrb[12].mxu0 %vm398_vm1, %v3382_v26 }
 0x6d9   : > { %2946 = vmatprep.mubr.msk.f32.mxu0 %vm3234_vm0, %v3235_v11  ;;  %3144 = vmatpush3.bf16.msra.mxu0 %v3143_v52  ;;  %v2573_v52 = vld [vmem:[%s3857_s2 + $0x3] ss:$0 sm:$0xff] }
 0x6da   : > { %3145 = vmatprep.subr.bf16.mxu0 %v3233_v3 }
 0x6dd   : > { %3147 = vmatpush3.bf16.msra.mxu0 %v3146_v54 }
 0x6de   : > { %3148 = vmatprep.subr.bf16.mxu0 %v3233_v3 }
 0x79b   : > { %v1301_v41 = vpop.f32.mrb[10].mxu0 }
 0x79c   : > { %v3654_v42 = vadd.f32 %v3567_v56, %v1301_v41  ;;  %v2884_v43 = vpop.f32.mrb[11].mxu0  ;;  %v2552_v56 = vld [vmem:[%s3860_s5 + $0xa8] sm:$0xff]  ;;  %v2570_v41 = vld [vmem:[%s3856_s1 + $0xf0] sm:$0xff] }
 0x79d   : > { %v3149_v57 = vpack.c.bf16 %v2552_v56, %v2551_v55  ;;  %v2571_v43 = vld [vmem:[%s3856_s1 + $0xf8] sm:$0xff] }
 0x79f   : > { %3150 = vmatpush3.bf16.msra.mxu0 %v3149_v57  ;;  %v2586_v57 = vld [vmem:[%s3860_s5 + $0xc0] sm:$0xff] }
 0x7a0   : > { %3151 = vmatprep.subr.bf16.mxu0 %v3233_v3 }
 0x7a3   : > { %3153 = vmatpush3.bf16.msra.mxu0 %v3152_v60  ;;  %v2589_v60 = vld [vmem:[%s3860_s5 + $0xd8] sm:$0xff] }
 0x7a4   : > { %3169 = vmatprep.subr.bf16.mxu0 %v3233_v3 }
 0x7a6   : > { %2947 = vmatmul.mubr.msk.f32.vlgmr.msra.gmra.mrb[14].mxu0 %vm398_vm1, %v3382_v26 }
 0x7a7   : > { %3001 = vmatprep.mubr.msk.f32.mxu0 %vm3234_vm0, %v3235_v11  ;;  %3171 = vmatpush3.bf16.msra.mxu0 %v3170_v13 }
 0x7a8   : > { %3172 = vmatprep.subr.bf16.mxu0 %v3233_v3 }
 0x7ab   : > { %v1461_v45 = vpop.f32.mrb[12].mxu0  ;;  %3174 = vmatpush3.bf16.msra.mxu0 %v3173_v22 }
 0x7ac   : > { %v1462_v46 = vadd.f32 %v2534_v44, %v1461_v45  ;;  %v2910_v47 = vpop.f32.mrb[13].mxu0  ;;  %3175 = vmatprep.subr.bf16.mxu0 %v3233_v3  ;;  %v3167_v44 = vpack.c.bf16 %v2571_v43, %v2570_v41  ;;  %v2584_v45 = vld [vmem:[%s3859_s4 + $0x3] ss:$0 sm:$0xff]  ;;  %v2605_v43 = vld [vmem:[%s3865_s10] ss:$0 sm:$0xff] }
 0x7ae   : > { %v1465_v48 = vmul.f32 0.25, %v1462_v46 }
 0x7af   : > { %3177 = vmatpush3.bf16.msra.mxu0 %v3176_v25 }
 0x7b0   : > { %2952 = vmatmul.mubr.msk.f32.vlgmr.msra.gmra.mrb[14].mxu1 %vm643_vm2, %v1465_v48  ;;  %3178 = vmatprep.subr.bf16.mxu0 %v3233_v3 }
 0x7b1   : > { %2956 = vmatprep.mubr.msk.f32.mxu1 %vm3234_vm0, %v3235_v11 }
 0x7b3   : > { %3180 = vmatpush3.bf16.msra.mxu0 %v3179_v29  ;;  %v2603_v29 = vld [vmem:[%s3863_s8] ss:$0 sm:$0xff] }
 0x7b4   : > { %3023 = vmatprep.subr.mxu0 %v3235_v11 }
 0x7b6   : > { %3002 = vmatmul.mubr.msk.f32.vlgmr.msra.gmra.mrb[16].mxu0 %vm398_vm1, %v3382_v26 }
 0x7b7   : > { %3025 = vmatprep.mubr.msk.f32.mxu0 %vm3234_vm0, %v3235_v11 }
 0x879   : > { %v1636_v6 = vpop.f32.mrb[14].mxu0 }
 0x87a   : > { %v2948_v8 = vpop.f32.mrb[15].mxu0  ;;  %v1637_v9 = vadd.f32 %v2556_v7, %v1636_v6 }
 0x87c   : > { %2955 = vmatpush3.msra.mxu1 %v1637_v9 }
 0x87d   : > { %3154 = vmatprep.subr.bf16.mxu1 %v3233_v3 }
 0x883   : > { %v1712_v61 = vpop.f32.mrb[14].mxu1 }
 0x884   : > { %v2953_v62 = vpop.f32.mrb[15].mxu1  ;;  %v1716_v63 = vsel %vm720_vm3, %v1712_v61, -inf }
 0x885   : > { %1717 = vmax.xlane.f32.xlu0 %v1716_v63  ;;  %v2590_v62 = vld [vmem:[%s3860_s5 + $0xe0] sm:$0xff]  ;;  %v2591_v63 = vld [vmem:[%s3860_s5 + $0xe8] sm:$0xff] }
 0x889   : > { %v2048_v46 = vpop.f32.mrb[16].mxu0 }
 0x88a   : > { %v2049_v47 = vadd.f32 %v2584_v45, %v2048_v46  ;;  %v3003_v48 = vpop.f32.mrb[17].mxu0 }
 0x88c   : > { %3024 = vmatpush3.xpose.msk.msra.mxu0 %vm643_vm2, %v2049_v47 }
 0x88d   : > { %3028 = vmatprep.subr.mxu0 %v3235_v11 }
 0x912   : > { %v1718_v0 = vpop.xlane.xlu0 %1717 }
 0x913   : > { %v1719_v1 = vsub.f32 %v1712_v61, %v1718_v0  ;;  %v3185_v61 = vpack.c.bf16 %v2589_v60, %v2588_v58  ;;  %v3188_v0 = vpack.c.bf16 %v2591_v63, %v2590_v62 }
 0x915   : > { %v1720_v2 = vmul.f32 1.442695, %v1719_v1  ;;  %v2592_v1 = vld [vmem:[%s3860_s5 + $0xf0] sm:$0xff] }
 0x917   : > { %3215 = vpow2.f32 %v1720_v2  ;;  %v2593_v2 = vld [vmem:[%s3860_s5 + $0xf8] sm:$0xff] }
 0x921   : > { %v3216_v4 = vpop.eup %3215 }
 0x922   : > { %v1722_v5 = vsel %vm720_vm3, %v3216_v4, 0.0 }
 0x923   : > { %1723 = vadd.xlane.f32.xlu1 %v1722_v5 }
 0x9b0   : > { %v1724_v14 = vpop.xlane.xlu1 %1723 }
 0x9b1   : > { %3217 = vrcp.f32 %v1724_v14 }
 0x9bb   : > { %v3218_v17 = vpop.eup %3217 }
 0x9bc   : > { %v1726_v19 = vmul.f32 %v3218_v17, %v3216_v4  ;;  %v3191_v4 = vpack.c.bf16 %v2593_v2, %v2592_v1 }
 0x9be   : > { %2957 = vmatmul.mubr.msk.f32.vlgmr.msra.gmra.mrb[16].mxu1 %vm720_vm3, %v1726_v19  ;;  %v2600_v19 = vld [vmem:[%s3862_s7 + $0x30] sm:$0xff] }
 0x9bf   : > { %3156 = vmatpush3.bf16.msra.mxu1 %v3155_v18  ;;  %2963 = vmatprep.mubr.msk.f32.mxu1 %vm3234_vm0, %v3235_v11  ;;  %v3194_v22 = vpack.c.bf16 %v2601_v20, %v2600_v19 }
 0x9c0   : > { %3157 = vmatprep.subr.bf16.mxu1 %v3233_v3 }
 0xa91   : > { %v1796_v35 = vpop.f32.mrb[16].mxu1 }
 0xa92   : > { %v2958_v36 = vpop.f32.mrb[17].mxu1  ;;  %2964 = vmatmul.mubr.msk.f32.vlgmr.msra.gmra.mrb[18].mxu1 %vm643_vm2, %v1796_v35 }
 0xa93   : > { %3159 = vmatpush3.bf16.msra.mxu1 %v3158_v32  ;;  %2982 = vmatprep.mubr.msk.f32.mxu1 %vm3234_vm0, %v3235_v11 }
 0xa94   : > { %3160 = vmatprep.subr.bf16.mxu1 %v3233_v3 }
 0xa97   : > { %3162 = vmatpush3.bf16.msra.mxu1 %v3161_v37 }
 0xa98   : > { %3163 = vmatprep.subr.bf16.mxu1 %v3233_v3 }
 0xa9b   : > { %3165 = vmatpush3.bf16.msra.mxu1 %v3164_v40 }
 0xa9c   : > { %3166 = vmatprep.subr.bf16.mxu1 %v3233_v3 }
 0xa9f   : > { %3168 = vmatpush3.bf16.msra.mxu1 %v3167_v44 }
 0xaa0   : > { %3181 = vmatprep.subr.bf16.mxu1 %v3233_v3 }
 0xaa2   : > { %2983 = vmatmul.mubr.msk.f32.vlgmr.msra.gmra.mrb[20].mxu1 %vm398_vm1, %v3382_v26 }
 0xaa3   : > { %3020 = vmatprep.mubr.msk.f32.mxu1 %vm3234_vm0, %v3235_v11 }
 0xb65   : > { %v1872_v49 = vpop.f32.mrb[18].mxu1 }
 0xb66   : > { %v1876_v50 = vadd.f32 %v1872_v49, %v3654_v42  ;;  %v2965_v51 = vpop.f32.mrb[19].mxu1  ;;  %v2587_v42 = vld [vmem:[%s3860_s5 + $0xc8] sm:$0xff] }
 0xb67   : > { %v3182_v59 = vpack.c.bf16 %v2587_v42, %v2586_v57 }
 0xb69   : > { %3183 = vmatpush3.bf16.msra.mxu1 %v3182_v59 }
 0xb6a   : > { %3184 = vmatprep.subr.bf16.mxu1 %v3233_v3 }
 0xb6d   : > { %3186 = vmatpush3.bf16.msra.mxu1 %v3185_v61 }
 0xb6e   : > { %3187 = vmatprep.subr.bf16.mxu1 %v3233_v3 }
 0xb71   : > { %3189 = vmatpush3.bf16.msra.mxu1 %v3188_v0 }
 0xb72   : > { %3190 = vmatprep.subr.bf16.mxu1 %v3233_v3 }
 0xb75   : > { %v1960_v53 = vpop.f32.mrb[20].mxu1  ;;  %3192 = vmatpush3.bf16.msra.mxu1 %v3191_v4 }
 0xb76   : > { %v1961_v54 = vadd.f32 %v2573_v52, %v1960_v53  ;;  %v2984_v55 = vpop.f32.mrb[21].mxu1 }
 0xb78   : > { %v1964_v56 = vmul.f32 0.25, %v1961_v54  ;;  %3021 = vmatmul.mubr.msk.f32.vlgmr.msra.gmra.mrb[22].mxu1 %vm398_vm1, %v3382_v26 }
 0xb7a   : > { %3026 = vmatmul.mubr.msk.f32.vlgmr.msra.gmra.mrb[18].mxu0 %vm643_vm2, %v1964_v56 }
 0xb7b   : > { %3030 = vmatprep.mubr.msk.f32.mxu0 %vm3234_vm0, %v3235_v11 }
 0xc4b   : > { %v2135_v14 = vpop.f32.mrb[22].mxu1 }
 0xc4c   : > { %v3022_v16 = vpop.f32.mrb[23].mxu1  ;;  %v2136_v17 = vadd.f32 %v2595_v15, %v2135_v14 }
 0xc4d   : > { %v2211_v5 = vpop.f32.mrb[18].mxu0 }
 0xc4e   : > { %v3027_v6 = vpop.f32.mrb[19].mxu0  ;;  %v2215_v7 = vsel %vm720_vm3, %v2211_v5, -inf  ;;  %3029 = vmatpush3.msra.mxu0 %v2136_v17 }
 0xc4f   : > { %2216 = vmax.xlane.f32.xlu0 %v2215_v7  ;;  %3193 = vmatprep.subr.bf16.mxu0 %v3233_v3 }
 0xcdc   : > { %v2217_v8 = vpop.xlane.xlu0 %2216 }
 0xcdd   : > { %v2218_v9 = vsub.f32 %v2211_v5, %v2217_v8 }
 0xcdf   : > { %v2219_v10 = vmul.f32 1.442695, %v2218_v9 }
 0xce1   : > { %3219 = vpow2.f32 %v2219_v10 }
 0xceb   : > { %v3220_v12 = vpop.eup %3219 }
 0xcec   : > { %v2221_v13 = vsel %vm720_vm3, %v3220_v12, 0.0 }
 0xced   : > { %2222 = vadd.xlane.f32.xlu1 %v2221_v13 }
 0xd7a   : > { %v2223_v18 = vpop.xlane.xlu1 %2222 }
 0xd7b   : > { %3221 = vrcp.f32 %v2223_v18 }
 0xd85   : > { %v3222_v21 = vpop.eup %3221 }
 0xd86   : > { %v2225_v23 = vmul.f32 %v3222_v21, %v3220_v12 }
 0xd88   : > { %3031 = vmatmul.mubr.msk.f32.vlgmr.msra.gmra.mrb[20].mxu0 %vm720_vm3, %v2225_v23 }
 0xd89   : > { %3195 = vmatpush3.bf16.msra.mxu0 %v3194_v22  ;;  %3037 = vmatprep.mubr.msk.f32.mxu0 %vm3234_vm0, %v3235_v11 }
 0xe5b   : > { %v2295_v3 = vpop.f32.mrb[20].mxu0 }
 0xe5c   : > { %v3032_v24 = vpop.f32.mrb[21].mxu0  ;;  %3038 = vmatmul.mubr.msk.f32.vlgmr.msra.gmra.mrb[22].mxu0 %vm643_vm2, %v2295_v3 }
 0xf2f   : > { %v2371_v25 = vpop.f32.mrb[22].mxu0 }
 0xf30   : > { %v2375_v27 = vadd.f32 %v2371_v25, %v1876_v50  ;;  %v3039_v28 = vpop.f32.mrb[23].mxu0 }
 0xf32   : > { %v2376_v30 = vadd.f32 %v2375_v27, %v3382_v26  ;;  %v2604_v26 = vld [vmem:[%s3864_s9] ss:$0 sm:$0xff] }
 0xf34   : > { %v2384_v31 = vadd.f32 %v2603_v29, %v2376_v30 }
 0xf36   : > { %v2385_v32 = vsel %vm398_vm1, %v2384_v31, 0.0 }
 0xf37   : > { %2386 = vadd.xlane.f32.xlu0 %v2385_v32 }
 0xfc4   : > { %v2387_v33 = vpop.xlane.xlu0 %2386 }
 0xfc5   : > { %v2389_v11 = vmul.f32 0.015625, %v2387_v33 }
 0xfc7   : > { %v2390_v34 = vsub.f32 %v2384_v31, %v2389_v11 }
 0xfc9   : > { %v2391_v35 = vmul.f32 %v2390_v34, %v2390_v34 }
 0xfcb   : > { %v2392_v36 = vsel %vm398_vm1, %v2391_v35, 0.0 }
 0xfcc   : > { %2393 = vadd.xlane.f32.xlu1 %v2392_v36 }
0x1059   : > { %v2394_v37 = vpop.xlane.xlu1 %2393 }
0x105a   : > { %v2395_v38 = vmul.f32 0.015625, %v2394_v37 }
0x105c   : > { %v2396_v39 = vadd.f32 1e-05, %v2395_v38 }
0x105e   : > { %3223 = vrsqrt.f32 %v2396_v39 }
0x1068   : > { %v3224_v40 = vpop.eup %3223 }
0x1069   : > { %v2398_v41 = vmul.f32 %v3224_v40, %v2390_v34 }
0x106b   : > { %v2406_v44 = vmul.f32 %v2604_v26, %v2398_v41 }
0x106d   : > { %v2414_v45 = vadd.f32 %v2605_v43, %v2406_v44 }
0x106f   : > { %2415 = vst.msk [vmem:[%s381_s22] sm:$0xff] %vm398_vm1, %v2414_v45 }
0x1070 PF: > { %s21_s17 = sadd.s32 1, %s3231_s17  }
0x1071   : > { %p18_p4 = scmp.ge.s32.totalorder %s21_s17, 4  }
0x1073   :  { %20 = sbr.rel (!%p18_p4) target bundleno = 1 (0x1), region = 115 }

</bundles_post_ra>
